<compile_context>
chip_gen: v7x
topology: tpu7x:2x2x1
jax: 0.10.0
libtpu: 0.0.40
codegen_flags: <defaults>
</compile_context>

<pallas_src>
import functools
import math

import jax
import jax.numpy as jnp
from jax import lax
from jax.experimental import pallas as pl
from jax.experimental.pallas import tpu as pltpu


_VMEM_SMALL = 32 * 1024 * 1024   # scoped VMEM for the tiled streaming kernels
_VMEM_BLOCK = 40 * 1024 * 1024   # fused block kernel budget (fits v7x 64 MiB)


def _round_up(n, m):
    return ((n + m - 1) // m) * m


def _row_chunk(h, w, target=512):
    """Largest divisor of h with chunk_rows * w <= target (at least 1)."""
    th = max(1, min(h, max(1, target // max(w, 1))))
    while h % th:
        th -= 1
    return th


# ----------------------------------------------------------------------------
# Kernel 1: stem conv — Conv2d(3x3, s=2, p=1) as a row-tiled im2col matmul
# (bf16 operands, f32 accumulation) + LeakyReLU, writing bf16 activations and
# one merged per-tile (sum, sumsq) statistics block for the training-mode
# BatchNorm that follows.
# ----------------------------------------------------------------------------
def _stem_conv_kernel(p_ref, w_ref, b_ref, y_ref, st_ref, *, rows_total):
    i = pl.program_id(0)
    tm = y_ref.shape[0]
    acc = jnp.dot(p_ref[...], w_ref[...],
                  preferred_element_type=jnp.float32) + b_ref[...]
    # nn.LeakyReLU default negative_slope = 0.01
    y = jnp.where(acc >= 0, acc, 0.01 * acc)
    y_ref[...] = y.astype(y_ref.dtype)
    # mask rows that only exist because of row padding out of the BN stats
    row_ids = i * tm + lax.broadcasted_iota(jnp.int32, y.shape, 0)
    yv = jnp.where(row_ids < rows_total, y, 0.0)
    s = jnp.sum(yv, axis=0, keepdims=True)            # (1, Cout)
    ss = jnp.sum(yv * yv, axis=0, keepdims=True)      # (1, Cout)
    st_ref[0] = jnp.concatenate([s, ss], axis=0)      # (2, Cout)


def stem_conv_bn(x_nhwc, w_hwio, b, bn_g, bn_b,
                 in_scale=None, in_shift=None, tm=1024):
    """DownSampleConvBlock: Conv2d(3,3,s=2,p=1) -> LeakyReLU -> BatchNorm2d.

    BatchNorm uses training-mode batch statistics (default nn.Module state).
    The *previous* layer's folded BN affine (in_scale/in_shift) is applied
    here in JAX so XLA fuses it into the im2col write (no extra HBM pass);
    this layer returns its own (scale, shift) for the next consumer.
    """
    B, H, W, Cin = x_nhwc.shape
    Cout = w_hwio.shape[-1]
    Ho, Wo = H // 2, W // 2
    rows = B * Ho * Wo

    x = x_nhwc.astype(jnp.float32)
    if in_scale is not None:
        x = x * in_scale + in_shift        # previous layer's BN, fused by XLA
    x = x.astype(jnp.bfloat16)             # bf16 HBM intermediates

    # TODO(synk): the im2col below still materializes a 9x patch tensor in
    # HBM; a haloed manual-DMA row tile of the padded NHWC input would remove
    # that traffic entirely.
    xp = jnp.pad(x, ((0, 0), (1, 1), (1, 1), (0, 0)))
    cols = []
    for ki in range(3):
        for kj in range(3):
            cols.append(xp[:, ki:ki + 2 * Ho - 1:2, kj:kj + 2 * Wo - 1:2, :])
    patches = jnp.stack(cols, axis=3).reshape(rows, 9 * Cin)
    wmat = w_hwio.reshape(9 * Cin, Cout).astype(jnp.bfloat16)

    tm_eff = min(tm, _round_up(rows, 8))
    nt = pl.cdiv(rows, tm_eff)
    rows_p = nt * tm_eff
    if rows_p != rows:
        patches = jnp.pad(patches, ((0, rows_p - rows), (0, 0)))

    kernel = functools.partial(_stem_conv_kernel, rows_total=rows)
    y, st = pl.pallas_call(
        kernel,
        out_shape=(jax.ShapeDtypeStruct((rows_p, Cout), jnp.bfloat16),
                   jax.ShapeDtypeStruct((nt, 2, Cout), jnp.float32)),
        grid=(nt,),
        in_specs=[pl.BlockSpec((tm_eff, 9 * Cin), lambda i: (i, 0)),
                  pl.BlockSpec((9 * Cin, Cout), lambda i: (0, 0)),
                  pl.BlockSpec((1, Cout), lambda i: (0, 0))],
        out_specs=(pl.BlockSpec((tm_eff, Cout), lambda i: (i, 0)),
                   pl.BlockSpec((1, 2, Cout), lambda i: (i, 0, 0))),
        compiler_params=pltpu.CompilerParams(
            dimension_semantics=("parallel",),
            vmem_limit_bytes=_VMEM_SMALL),
    )(patches, wmat, b.reshape(1, Cout).astype(jnp.float32))

    # Finalize batch statistics (tiny reduction) and fold BN into scale/shift.
    tot = jnp.sum(st[:, 0, :], axis=0)
    tot_sq = jnp.sum(st[:, 1, :], axis=0)
    mean = tot / rows
    var = jnp.maximum(tot_sq / rows - mean * mean, 0.0)   # biased (training BN)
    scale = bn_g * lax.rsqrt(var + 1e-5)
    shift = bn_b - mean * scale

    y = y[:rows].reshape(B, Ho, Wo, Cout)
    return y, scale, shift


# ----------------------------------------------------------------------------
# Kernel 2: row-tiled (x*scale + shift) -> LayerNorm over channels (eps=1e-6).
# Used for the stem's channels_first LN (absorbing the last BN affine) and for
# the final nn.LayerNorm (identity pre-affine).
# ----------------------------------------------------------------------------
def _affine_ln_kernel(x_ref, s_ref, t_ref, w_ref, b_ref, o_ref):
    x = x_ref[...].astype(jnp.float32) * s_ref[...] + t_ref[...]
    mu = jnp.mean(x, axis=-1, keepdims=True)
    var = jnp.mean((x - mu) ** 2, axis=-1, keepdims=True)
    o_ref[...] = (x - mu) * lax.rsqrt(var + 1e-6) * w_ref[...] + b_ref[...]


def layernorm(x2d, w, b, pre_scale=None, pre_shift=None, tm=1024):
    N, C = x2d.shape
    if pre_scale is None:
        pre_scale = jnp.ones((C,), jnp.float32)
        pre_shift = jnp.zeros((C,), jnp.float32)
    tm_eff = min(tm, _round_up(N, 8))
    nt = pl.cdiv(N, tm_eff)
    Np = nt * tm_eff
    xin = jnp.pad(x2d, ((0, Np - N), (0, 0))) if Np != N else x2d
    out = pl.pallas_call(
        _affine_ln_kernel,
        out_shape=jax.ShapeDtypeStruct((Np, C), jnp.float32),
        grid=(nt,),
        in_specs=[pl.BlockSpec((tm_eff, C), lambda i: (i, 0)),
                  pl.BlockSpec((1, C), lambda i: (0, 0)),
                  pl.BlockSpec((1, C), lambda i: (0, 0)),
                  pl.BlockSpec((1, C), lambda i: (0, 0)),
                  pl.BlockSpec((1, C), lambda i: (0, 0))],
        out_specs=pl.BlockSpec((tm_eff, C), lambda i: (i, 0)),
        compiler_params=pltpu.CompilerParams(
            dimension_semantics=("parallel",),
            vmem_limit_bytes=_VMEM_SMALL),
    )(xin, pre_scale.reshape(1, C), pre_shift.reshape(1, C),
      w.reshape(1, C), b.reshape(1, C))
    return out[:N] if Np != N else out


# ----------------------------------------------------------------------------
# Kernel 3: fused ConvNeXtV2 Block (per batch element, row-chunked):
#   pass A: 7x7 depthwise conv (halo built in a VMEM scratch) -> LN ->
#           pwconv1 -> GELU ; h stashed (bf16) in VMEM, sum(h^2) accumulated.
#   pass B: GRN apply -> pwconv2 -> residual add -> output.
# ----------------------------------------------------------------------------
def _block_kernel(x_ref, dww_ref, dwb_ref, lnw_ref, lnb_ref,
                  w1_ref, b1_ref, gg_ref, gb_ref, w2_ref, b2_ref,
                  o_ref, xpad_ref, hbuf_ref, gsq_ref,
                  *, H, W, C, C4, TH):
    TQ = TH * W
    nch = H // TH

    # halo-3 padded copy of x in VMEM (replaces the XLA-side jnp.pad and the
    # duplicate HBM read of the unpadded input of the previous version).
    xpad_ref[...] = jnp.zeros(xpad_ref.shape, xpad_ref.dtype)

    def _fill(i, c):
        r0 = i * TH
        xpad_ref[pl.ds(3 + r0, TH), pl.ds(3, W), :] = x_ref[pl.ds(r0, TH), :, :]
        return c
    lax.fori_loop(0, nch, _fill, 0)

    gsq_ref[...] = jnp.zeros(gsq_ref.shape, gsq_ref.dtype)

    def _pass_a(i, c):
        r0 = i * TH
        # depthwise 7x7: one sublane (W) shift per kj, cheap H shifts inside.
        # TODO(synk): on v6e/v7x a bf16 VPU multiply + pltpu.roll variant would
        # further relieve the VALU slot (v5e has no bf16 VPU).
        acc = jnp.zeros((TH, W, C), jnp.float32)
        for kj in range(7):
            xw = xpad_ref[pl.ds(r0, TH + 6), pl.ds(kj, W), :]   # (TH+6, W, C)
            for ki in range(7):
                w_tap = dww_ref[pl.ds(ki * 7 + kj, 1), :]        # (1, C)
                acc = acc + xw[ki:ki + TH] * w_tap
        xdw = acc.reshape(TQ, C) + dwb_ref[...]

        # LayerNorm over channels (eps 1e-6)
        mu = jnp.mean(xdw, axis=-1, keepdims=True)
        var = jnp.mean((xdw - mu) ** 2, axis=-1, keepdims=True)
        xn = (xdw - mu) * lax.rsqrt(var + 1e-6) * lnw_ref[...] + lnb_ref[...]

        # pwconv1 (bf16 MXU, f32 acc) + exact (erf) GELU (matches nn.GELU())
        h = jnp.dot(xn.astype(jnp.bfloat16), w1_ref[...],
                    preferred_element_type=jnp.float32) + b1_ref[...]
        h = 0.5 * h * (1.0 + lax.erf(h * 0.7071067811865475))

        # GRN partial: per-channel sum of squares over this chunk's positions
        gsq_ref[...] = gsq_ref[...] + jnp.sum(h * h, axis=0, keepdims=True)
        hbuf_ref[pl.ds(i * TQ, TQ), :] = h.astype(jnp.bfloat16)
        return c
    lax.fori_loop(0, nch, _pass_a, 0)

    # GRN global stats over all HW positions of this batch element.
    gx = jnp.sqrt(gsq_ref[...])                                   # (1, 4C)
    nx = gx / (jnp.mean(gx, axis=-1, keepdims=True) + 1e-6)
    coef = gg_ref[...] * nx + 1.0      # gamma*(h*Nx)+beta+h == h*coef + beta
    beta = gb_ref[...]

    def _pass_b(i, c):
        r0 = i * TH
        h = hbuf_ref[pl.ds(i * TQ, TQ), :].astype(jnp.float32)
        g = h * coef + beta
        y = jnp.dot(g.astype(jnp.bfloat16), w2_ref[...],
                    preferred_element_type=jnp.float32) + b2_ref[...]
        xin = x_ref[pl.ds(r0, TH), :, :].reshape(TQ, C)
        o_ref[pl.ds(r0, TH), :, :] = (xin + y).reshape(TH, W, C)
        return c
    lax.fori_loop(0, nch, _pass_b, 0)


def convnext_block(x_nhwc, p, target_rows=512):
    B, H, W, C = x_nhwc.shape
    C4 = 4 * C
    TH = _row_chunk(H, W, target_rows)
    # TODO(synk): for very large HW*dim an additional HW grid axis (with the
    # sum(h^2) scratch carried across it) would restore pipelining depth and
    # shard across v7x's two TensorCores even at B=1.
    kernel = functools.partial(_block_kernel, H=H, W=W, C=C, C4=C4, TH=TH)
    vec = lambda a, n: a.reshape(1, n).astype(jnp.float32)
    out = pl.pallas_call(
        kernel,
        out_shape=jax.ShapeDtypeStruct((B, H, W, C), jnp.float32),
        grid=(B,),
        in_specs=[pl.BlockSpec((None, H, W, C), lambda b: (b, 0, 0, 0)),
                  pl.BlockSpec((49, C), lambda b: (0, 0)),
                  pl.BlockSpec((1, C), lambda b: (0, 0)),
                  pl.BlockSpec((1, C), lambda b: (0, 0)),
                  pl.BlockSpec((1, C), lambda b: (0, 0)),
                  pl.BlockSpec((C, C4), lambda b: (0, 0)),
                  pl.BlockSpec((1, C4), lambda b: (0, 0)),
                  pl.BlockSpec((1, C4), lambda b: (0, 0)),
                  pl.BlockSpec((1, C4), lambda b: (0, 0)),
                  pl.BlockSpec((C4, C), lambda b: (0, 0)),
                  pl.BlockSpec((1, C), lambda b: (0, 0))],
        out_specs=pl.BlockSpec((None, H, W, C), lambda b: (b, 0, 0, 0)),
        scratch_shapes=[pltpu.VMEM((H + 6, W + 6, C), jnp.float32),
                        pltpu.VMEM((H * W, C4), jnp.bfloat16),
                        pltpu.VMEM((1, C4), jnp.float32)],
        compiler_params=pltpu.CompilerParams(
            dimension_semantics=("parallel",),
            vmem_limit_bytes=_VMEM_BLOCK),
    )(x_nhwc.astype(jnp.float32),
      p['dw_w'].reshape(49, C), vec(p['dw_b'], C),
      vec(p['ln_w'], C), vec(p['ln_b'], C),
      p['w1'].astype(jnp.bfloat16), vec(p['b1'], C4),
      p['grn_g'].reshape(1, C4), p['grn_b'].reshape(1, C4),
      p['w2'].astype(jnp.bfloat16), vec(p['b2'], C))
    return out


# ----------------------------------------------------------------------------
# Position / coordinate helpers (tiny -> plain JAX glue)
# ----------------------------------------------------------------------------
def get_2dpos_of_curr_ps_in_min_ps(H, W, patch_size, min_patch_size, scale):
    step = patch_size // min_patch_size
    xs = jnp.arange(0, W // min_patch_size, step, dtype=jnp.int32)
    ys = jnp.arange(0, H // min_patch_size, step, dtype=jnp.int32)
    gx, gy = jnp.meshgrid(xs, ys, indexing='ij')               # (Wp, Hp)
    coords = jnp.stack([gx, gy], axis=-1)                      # (Wp, Hp, 2)
    coords = jnp.transpose(coords, (1, 0, 2)).reshape(-1, 2)   # (Hp*Wp, 2)=(x,y)
    n = coords.shape[0]
    scale_col = jnp.full((n, 1), scale, dtype=jnp.int32)
    return jnp.concatenate([scale_col, coords], axis=1)        # (N, 3)


def sine_pos_embed(coords, num_pos_feats, temperature=10000.0):
    # coords: (B, N, 2) with columns (x, y)
    # TODO(synk): PositionEmbeddingSine source not provided in the reference;
    # a standard normalized sine/cosine point-coordinate embedding is used.
    eps = 1e-6
    scale = 2.0 * math.pi
    x_embed = coords[..., 0] / (jnp.max(coords[..., 0]) + eps) * scale
    y_embed = coords[..., 1] / (jnp.max(coords[..., 1]) + eps) * scale
    dim_t = jnp.arange(num_pos_feats, dtype=jnp.float32)
    dim_t = temperature ** (2.0 * jnp.floor(dim_t / 2.0) / num_pos_feats)

    def _emb(e):
        p = e[..., None] / dim_t
        p = jnp.stack([jnp.sin(p[..., 0::2]), jnp.cos(p[..., 1::2])], axis=-1)
        return p.reshape(p.shape[0], p.shape[1], -1)

    return jnp.concatenate([_emb(y_embed), _emb(x_embed)], axis=-1)


# ----------------------------------------------------------------------------
# Parameter init (deterministic; mirrors _init_weights: trunc_normal std=0.02
# on conv/linear weights, biases 0, norm weights 1 / biases 0, GRN gamma=beta=0)
# ----------------------------------------------------------------------------
def trunc_normal(key, shape, std=0.02):
    return std * jax.random.truncated_normal(key, -2.0, 2.0, shape, jnp.float32)


def init_params(key, in_chans, patch_size, dim, depth):
    n_layers = int(round(math.log2(patch_size)))
    emb_dims = [int(dim // 2 ** (n_layers - 1 - i)) for i in range(n_layers)]
    chans = [in_chans] + emb_dims
    keys = iter(jax.random.split(key, n_layers + 3 * depth + 2))

    stem_convs = []
    for i in range(n_layers):
        cin, cout = chans[i], chans[i + 1]
        stem_convs.append(dict(
            w=trunc_normal(next(keys), (3, 3, cin, cout)),
            b=jnp.zeros((cout,), jnp.float32),
            bn_g=jnp.ones((cout,), jnp.float32),
            bn_b=jnp.zeros((cout,), jnp.float32),
        ))

    blocks = []
    for _ in range(depth):
        blocks.append(dict(
            dw_w=trunc_normal(next(keys), (7, 7, dim)),
            dw_b=jnp.zeros((dim,), jnp.float32),
            ln_w=jnp.ones((dim,), jnp.float32),
            ln_b=jnp.zeros((dim,), jnp.float32),
            w1=trunc_normal(next(keys), (dim, 4 * dim)),
            b1=jnp.zeros((4 * dim,), jnp.float32),
            grn_g=jnp.zeros((1, 4 * dim), jnp.float32),
            grn_b=jnp.zeros((1, 4 * dim), jnp.float32),
            w2=trunc_normal(next(keys), (4 * dim, dim)),
            b2=jnp.zeros((dim,), jnp.float32),
        ))

    return dict(
        stem_convs=stem_convs,
        stem_ln_w=jnp.ones((dim,), jnp.float32),
        stem_ln_b=jnp.zeros((dim,), jnp.float32),
        blocks=blocks,
        norm_w=jnp.ones((dim,), jnp.float32),
        norm_b=jnp.zeros((dim,), jnp.float32),
    )


# ----------------------------------------------------------------------------
# Full forward (ConvNeXtV2.forward -> CNVNXT2.forward_features)
# ----------------------------------------------------------------------------
def convnextv2_forward(params, x_nchw, scale, patch_size, min_patch_size):
    B, _, H, W = x_nchw.shape
    patched_im_size = (H // patch_size, W // patch_size)
    min_patched_im_size = (H // min_patch_size, W // min_patch_size)

    x = jnp.transpose(x_nchw, (0, 2, 3, 1))              # NCHW -> NHWC

    # stem: OverlapPatchEmbedding (DownSampleConvBlocks + channels_first LN).
    # NOTE: BatchNorm uses training-mode batch statistics (default .train()
    # state of a fresh nn.Module; no running stats involved in the output).
    # Each layer's BN affine is deferred into the next consumer.
    bn_scale, bn_shift = None, None
    for conv in params['stem_convs']:
        x, bn_scale, bn_shift = stem_conv_bn(
            x, conv['w'], conv['b'], conv['bn_g'], conv['bn_b'],
            in_scale=bn_scale, in_shift=bn_shift)
    Bc, Hp, Wp, D = x.shape
    x = layernorm(x.reshape(-1, D), params['stem_ln_w'], params['stem_ln_b'],
                  pre_scale=bn_scale, pre_shift=bn_shift).reshape(Bc, Hp, Wp, D)

    # stage: ConvNeXtV2 blocks (fully fused per block)
    for blk in params['blocks']:
        x = convnext_block(x, blk)

    # flatten(2).transpose(1,2): with NHWC this is just a reshape (same order).
    x = x.reshape(B, Hp * Wp, D)

    pos = get_2dpos_of_curr_ps_in_min_ps(H, W, patch_size, min_patch_size, scale)
    pos = jnp.broadcast_to(pos[None], (B,) + pos.shape)   # (B, N, 3)
    pos_embed = sine_pos_embed(pos[:, :, 1:].astype(jnp.float32), D // 2)

    x = x + pos_embed
    x = layernorm(x.reshape(-1, D), params['norm_w'],
                  params['norm_b']).reshape(B, Hp * Wp, D)

    out_name = 'res5'
    outs = {
        out_name: x,
        out_name + '_pos': pos[:, :, 1:],
        out_name + '_spatial_shape': patched_im_size,
        out_name + '_scale': pos[:, :, 0],
        'min_spatial_shape': min_patched_im_size,
    }
    return outs


if __name__ == "__main__":
    key = jax.random.PRNGKey(0)
    kp, kx = jax.random.split(key)

    # small config consistent with the module: patch_size must be a power of 2
    in_chans = 3
    patch_size = 8
    min_patch_size = 4
    dim = 32
    depth = 2
    B, H, W = 2, 32, 32

    params = init_params(kp, in_chans, patch_size, dim, depth)
    x = jax.random.normal(kx, (B, in_chans, H, W), dtype=jnp.float32)

    outs = convnextv2_forward(params, x, scale=0,
                              patch_size=patch_size,
                              min_patch_size=min_patch_size)
    jax.block_until_ready(outs['res5'])
    assert outs['res5'].shape == (B, (H // patch_size) * (W // patch_size), dim)
    print("KERNEL_OK")
</pallas_src>

<mosaic_0001>
module attributes {stable_mosaic.version = 11 : i64} {
  func.func @_stem_conv_kernel(%arg0: i32, %arg1: memref<512x27xbf16, #tpu.memory_space<vmem>>, %arg2: memref<27x8xbf16, #tpu.memory_space<vmem>>, %arg3: memref<1x8xf32, #tpu.memory_space<vmem>>, %arg4: memref<512x8xbf16, #tpu.memory_space<vmem>>, %arg5: memref<1x2x8xf32, #tpu.memory_space<vmem>>) attributes {dimension_semantics = [#tpu.dimension_semantics<parallel>], iteration_bounds = array<i64: 1>, scalar_prefetch = 0 : i64, scratch_operands = 0 : i64, tpu.core_type = #tpu.core_type<tc>, window_params = [{transform_indices = @transform_0, window_bounds = array<i64: 512, 27>}, {pipeline_mode = #tpu.pipeline_mode<synchronous>, transform_indices = @transform_1, window_bounds = array<i64: 27, 8>}, {pipeline_mode = #tpu.pipeline_mode<synchronous>, transform_indices = @transform_2, window_bounds = array<i64: 1, 8>}, {transform_indices = @transform_3, window_bounds = array<i64: 512, 8>}, {transform_indices = @transform_4, window_bounds = array<i64: 1, 2, 8>}]} {
    %c0 = arith.constant 0 : index
    %c0_0 = arith.constant 0 : index
    %0 = vector.load %arg1[%c0, %c0_0] : memref<512x27xbf16, #tpu.memory_space<vmem>>, vector<512x27xbf16>
    %c0_1 = arith.constant 0 : index
    %c0_2 = arith.constant 0 : index
    %1 = vector.load %arg2[%c0_1, %c0_2] : memref<27x8xbf16, #tpu.memory_space<vmem>>, vector<27x8xbf16>
    %cst = arith.constant dense<0.000000e+00> : vector<512x8xf32>
    %2 = tpu.matmul %0, %1, %cst {dimension_numbers = #tpu.dot_dimension_numbers<[1], [0], [0], [1], [0, 0, 1, 1], [], []>} : vector<512x27xbf16>, vector<27x8xbf16>, vector<512x8xf32> -> vector<512x8xf32>
    %c0_3 = arith.constant 0 : index
    %c0_4 = arith.constant 0 : index
    %3 = vector.load %arg3[%c0_3, %c0_4] : memref<1x8xf32, #tpu.memory_space<vmem>>, vector<1x8xf32>
    %4 = vector.broadcast %3 : vector<1x8xf32> to vector<512x8xf32>
    %5 = arith.addf %2, %4 : vector<512x8xf32>
    %cst_5 = arith.constant 0.000000e+00 : f32
    %6 = vector.broadcast %cst_5 : f32 to vector<512x8xf32>
    %7 = arith.cmpf oge, %5, %6 : vector<512x8xf32>
    %cst_6 = arith.constant 0.00999999977 : f32
    %8 = vector.broadcast %cst_6 : f32 to vector<512x8xf32>
    %9 = arith.mulf %8, %5 : vector<512x8xf32>
    %10 = arith.select %7, %5, %9 : vector<512x8xi1>, vector<512x8xf32>
    %11 = arith.truncf %10 : vector<512x8xf32> to vector<512x8xbf16>
    %c0_7 = arith.constant 0 : index
    %c0_8 = arith.constant 0 : index
    %12 = vector.load %arg4[%c0_7, %c0_8] : memref<512x8xbf16, #tpu.memory_space<vmem>>, vector<512x8xbf16>
    tpu.vector_store %arg4[%c0_7, %c0_8], %11 {strides = array<i32>} : memref<512x8xbf16, #tpu.memory_space<vmem>>, vector<512x8xbf16>,
    %c512_i32 = arith.constant 512 : i32
    %13 = arith.muli %arg0, %c512_i32 : i32
    %14 = tpu.iota {dimensions = array<i32: 0>} : vector<512x8xi32>
    %15 = vector.broadcast %13 : i32 to vector<512x8xi32>
    %16 = arith.addi %15, %14 : vector<512x8xi32>
    %c512_i32_9 = arith.constant 512 : i32
    %17 = vector.broadcast %c512_i32_9 : i32 to vector<512x8xi32>
    %18 = arith.cmpi slt, %16, %17 : vector<512x8xi32>
    %cst_10 = arith.constant 0.000000e+00 : f32
    %19 = vector.broadcast %cst_10 : f32 to vector<512x8xf32>
    %20 = arith.select %18, %10, %19 : vector<512x8xi1>, vector<512x8xf32>
    %cst_11 = arith.constant dense<0.000000e+00> : vector<8xf32>
    %21 = vector.multi_reduction <add>, %20, %cst_11 [0] : vector<512x8xf32> to vector<8xf32>
    %22 = vector.shape_cast %21 : vector<8xf32> to vector<1x8xf32>
    %23 = arith.mulf %20, %20 : vector<512x8xf32>
    %cst_12 = arith.constant dense<0.000000e+00> : vector<8xf32>
    %24 = vector.multi_reduction <add>, %23, %cst_12 [0] : vector<512x8xf32> to vector<8xf32>
    %25 = vector.shape_cast %24 : vector<8xf32> to vector<1x8xf32>
    %26 = tpu.concatenate %22, %25 in 0 : vector<1x8xf32>, vector<1x8xf32> -> vector<2x8xf32>
    %c0_13 = arith.constant 0 : index
    %c0_14 = arith.constant 0 : index
    %c0_15 = arith.constant 0 : index
    %27 = vector.load %arg5[%c0_13, %c0_14, %c0_15] : memref<1x2x8xf32, #tpu.memory_space<vmem>>, vector<1x2x8xf32>
    %28 = vector.shape_cast %27 : vector<1x2x8xf32> to vector<2x8xf32>
    %29 = vector.shape_cast %26 : vector<2x8xf32> to vector<1x2x8xf32>
    tpu.vector_store %arg5[%c0_13, %c0_14, %c0_15], %29 {strides = array<i32>} : memref<1x2x8xf32, #tpu.memory_space<vmem>>, vector<1x2x8xf32>,
    return
  }
  func.func @transform_0(%arg0: i32) -> (i32, i32) {
    %c0_i32 = arith.constant 0 : i32
    %c0_i32_0 = arith.constant 0 : i32
    return %arg0, %c0_i32 : i32, i32
  }
  func.func @transform_1(%arg0: i32) -> (i32, i32) {
    %c0_i32 = arith.constant 0 : i32
    %c0_i32_0 = arith.constant 0 : i32
    %c0_i32_1 = arith.constant 0 : i32
    return %c0_i32, %c0_i32_0 : i32, i32
  }
  func.func @transform_2(%arg0: i32) -> (i32, i32) {
    %c0_i32 = arith.constant 0 : i32
    %c0_i32_0 = arith.constant 0 : i32
    %c0_i32_1 = arith.constant 0 : i32
    return %c0_i32, %c0_i32_0 : i32, i32
  }
  func.func @transform_3(%arg0: i32) -> (i32, i32) {
    %c0_i32 = arith.constant 0 : i32
    %c0_i32_0 = arith.constant 0 : i32
    return %arg0, %c0_i32 : i32, i32
  }
  func.func @transform_4(%arg0: i32) -> (i32, i32, i32) {
    %c0_i32 = arith.constant 0 : i32
    %c0_i32_0 = arith.constant 0 : i32
    %c0_i32_1 = arith.constant 0 : i32
    return %arg0, %c0_i32, %c0_i32_0 : i32, i32, i32
  }
}

</mosaic_0001>

<bundles_post_ra>
// kernel: tpu_custom_call.1
= control target key start
LH: loop header
LB: loop body
LE: loop exit
PB: predicated region body
PF: predicated region fallthrough
CT: control target
= control target key end

     0   :  { %vm361_vm0 = vcmask 1044480   ;;  %vm362_vm1 = vcmask 1045504   ;;  %v2144_v2 = vmov 65535   ;;  %vm264_vm2 = vcmask 220160   ;;  %s2907_s0 = inlined_call_operand.vmem [shape: bf16[512,27], index: 0, kind: input, shape index: {}]   ;;  %s2908_s1 = inlined_call_operand.vmem [shape: bf16[27,8], index: 1, kind: input, shape index: {}]   ;;  %s2909_s2 = inlined_call_operand.vmem [shape: f32[1,8], index: 2, kind: input, shape index: {}]   ;;  %s2910_s3 = inlined_call_operand.vmem [shape: bf16[512,8], index: 3, kind: output, shape index: {0}]   ;;  %s2911_s4 = inlined_call_operand.hbm [shape: f32[1,2,8], index: 4, kind: output, shape index: {1}]  }
   0x1   :  { %v2085_v0 = vld [vmem:[%s2908_s1] sm:$0xff]   ;;  %v2086_v1 = vld [vmem:[%s2908_s1 + $0x8] sm:$0x3f]   ;;  %v363_v3 = vsel %vm361_vm0, 4294967295, %v2144_v2  ;;  %v2089_v8 = vld [vmem:[%s2907_s0 + $0x10] sm:$0xff]  }
   0x2   :  { %2011 = vmatprep.subr.bf16.mxu0 %v2085_v0  ;;  %2079 = vmatprep.subr.bf16.mxu1 %v2085_v0  ;;  %v2087_v4 = vld [vmem:[%s2907_s0] sm:$0xff]   ;;  %v364_v5 = vsel %vm362_vm1, %v363_v3, 0  ;;  %v2088_v7 = vld [vmem:[%s2907_s0 + $0x8] sm:$0xff]   ;;  %v2090_v9 = vld [vmem:[%s2907_s0 + $0x18] sm:$0xff]  }
   0x3   :  { %2012 = vmatpush3.bf16.msra.mxu0 %v2085_v0  ;;  %2081 = vmatpush3.bf16.msra.mxu1 %v2085_v0  ;;  %v366_v6 = vand.u32 %v2086_v1, %v364_v5  ;;  %v2091_v10 = vld [vmem:[%s2907_s0 + $0x20] sm:$0xff]   ;;  %v2104_v12 = vld [vmem:[%s2907_s0 + $0x88] sm:$0xff]   ;;  %v2105_v13 = vld [vmem:[%s2907_s0 + $0x90] sm:$0xff]  }
   0x4   :  { %2015 = vmatprep.mubr.msk.bf16.mxu0 %vm264_vm2, %v2087_v4  ;;  %v2103_v11 = vld [vmem:[%s2907_s0 + $0x80] sm:$0xff]   ;;  %v2092_v14 = vld [vmem:[%s2907_s0 + $0x28] sm:$0xff]   ;;  %v2093_v15 = vld [vmem:[%s2907_s0 + $0x30] sm:$0xff]  }
   0x5   :  { %2013 = vmatprep.subr.bf16.mxu0 %v366_v6  ;;  %2080 = vmatprep.subr.bf16.mxu1 %v366_v6  ;;  %v2106_v16 = vld [vmem:[%s2907_s0 + $0x98] sm:$0xff]   ;;  %v2107_v17 = vld [vmem:[%s2907_s0 + $0xa0] sm:$0xff]   ;;  %v2108_v20 = vld [vmem:[%s2907_s0 + $0xa8] sm:$0xff]  }
   0x6   :  { %2047 = vmatprep.mubr.msk.bf16.mxu1 %vm264_vm2, %v2103_v11  ;;  %v2094_v18 = vld [vmem:[%s2907_s0 + $0x38] sm:$0xff]   ;;  %v2095_v19 = vld [vmem:[%s2907_s0 + $0x40] sm:$0xff]  }
   0x7   :  { %2014 = vmatpush3.bf16.msra.mxu0 %v366_v6  ;;  %2082 = vmatpush3.bf16.msra.mxu1 %v366_v6 }
   0xa   :  { %2016 = vmatmul.mubr.msk.bf16.vlgmr.msra.gmra.mrb[0].mxu0 %vm264_vm2, %v2088_v7  ;;  %2048 = vmatmul.mubr.msk.bf16.vlgmr.msra.gmra.mrb[0].mxu1 %vm264_vm2, %v2104_v12 }
   0xb   :  { %2019 = vmatprep.mubr.msk.bf16.mxu0 %vm264_vm2, %v2089_v8  ;;  %2051 = vmatprep.mubr.msk.bf16.mxu1 %vm264_vm2, %v2105_v13 }
  0x12   :  { %2020 = vmatmul.mubr.msk.bf16.gmra.mrb[4].mxu0 %vm264_vm2, %v2090_v9  ;;  %2052 = vmatmul.mubr.msk.bf16.gmra.mrb[4].mxu1 %vm264_vm2, %v2106_v16 }
  0x13   :  { %2023 = vmatprep.mubr.msk.bf16.mxu0 %vm264_vm2, %v2091_v10  ;;  %2055 = vmatprep.mubr.msk.bf16.mxu1 %vm264_vm2, %v2107_v17 }
  0x1a   :  { %2024 = vmatmul.mubr.msk.bf16.gmra.mrb[8].mxu0 %vm264_vm2, %v2092_v14 }
  0x1b   :  { %2027 = vmatprep.mubr.msk.bf16.mxu0 %vm264_vm2, %v2093_v15 }
  0x1c   :  { %10 = vsyncpa [#allocation3], 0  ;;  %v2109_v21 = vld [vmem:[%s2907_s0 + $0xb0] sm:$0xff]   ;;  %2056 = vmatmul.mubr.msk.bf16.gmra.mrb[8].mxu1 %vm264_vm2, %v2108_v20  ;;  %v2096_v22 = vld [vmem:[%s2907_s0 + $0x48] sm:$0xff]   ;;  %vm1105_vm4 = vcmask 60416   ;;  %vm1429_vm5 = vcmask 64512  }
  0x1d   :  { %2059 = vmatprep.mubr.msk.bf16.mxu1 %vm264_vm2, %v2109_v21  ;;  %v2097_v23 = vld [vmem:[%s2907_s0 + $0x50] sm:$0xff]   ;;  %v2110_v24 = vld [vmem:[%s2907_s0 + $0xb8] sm:$0xff]   ;;  %v2111_v25 = vld [vmem:[%s2907_s0 + $0xc0] sm:$0xff]  }
  0x1e   :  { %v2098_v26 = vld [vmem:[%s2907_s0 + $0x58] sm:$0xff]   ;;  %v2099_v27 = vld [vmem:[%s2907_s0 + $0x60] sm:$0xff]   ;;  %v2112_v28 = vld [vmem:[%s2907_s0 + $0xc8] sm:$0xff]  }
  0x1f   :  { %v2113_v29 = vld [vmem:[%s2907_s0 + $0xd0] sm:$0xff]   ;;  %v2100_v30 = vld [vmem:[%s2907_s0 + $0x68] sm:$0xff]   ;;  %v2114_v32 = vld [vmem:[%s2907_s0 + $0xd8] sm:$0xff]  }
  0x20   :  { %v2101_v31 = vld [vmem:[%s2907_s0 + $0x70] sm:$0xff]   ;;  %v2115_v33 = vld [vmem:[%s2907_s0 + $0xe0] sm:$0xff]   ;;  %v2102_v34 = vld [vmem:[%s2907_s0 + $0x78] sm:$0xff]  }
  0x21   :  { %v2116_v35 = vld [vmem:[%s2907_s0 + $0xe8] sm:$0xff]   ;;  %v2117_v36 = vld [vmem:[%s2907_s0 + $0xf0] sm:$0xff]   ;;  %v2118_v37 = vld [vmem:[%s2907_s0 + $0xf8] sm:$0xff]  }
  0x22   :  { %2028 = vmatmul.mubr.msk.bf16.gmra.mrb[12].mxu0 %vm264_vm2, %v2094_v18  ;;  %v2308_v38 = vld [vmem:[%s2909_s2] ss:$0 sm:$0xff] }
  0x23   :  { %2031 = vmatprep.mubr.msk.bf16.mxu0 %vm264_vm2, %v2095_v19 }
  0x24   :  { %2060 = vmatmul.mubr.msk.bf16.gmra.mrb[12].mxu1 %vm264_vm2, %v2110_v24 }
  0x25   :  { %2063 = vmatprep.mubr.msk.bf16.mxu1 %vm264_vm2, %v2111_v25 }
  0x2a   :  { %2032 = vmatmul.mubr.msk.bf16.gmra.mrb[16].mxu0 %vm264_vm2, %v2096_v22 }
  0x2b   :  { %2035 = vmatprep.mubr.msk.bf16.mxu0 %vm264_vm2, %v2097_v23 }
  0x2c   :  { %2064 = vmatmul.mubr.msk.bf16.gmra.mrb[16].mxu1 %vm264_vm2, %v2112_v28 }
  0x2d   :  { %2067 = vmatprep.mubr.msk.bf16.mxu1 %vm264_vm2, %v2113_v29 }
  0x32   :  { %2036 = vmatmul.mubr.msk.bf16.gmra.mrb[20].mxu0 %vm264_vm2, %v2098_v26 }
  0x33   :  { %2039 = vmatprep.mubr.msk.bf16.mxu0 %vm264_vm2, %v2099_v27 }
  0x34   :  { %2068 = vmatmul.mubr.msk.bf16.gmra.mrb[20].mxu1 %vm264_vm2, %v2114_v32 }
  0x35   :  { %2071 = vmatprep.mubr.msk.bf16.mxu1 %vm264_vm2, %v2115_v33 }
  0x3a   :  { %2040 = vmatmul.mubr.msk.bf16.gmra.mrb[24].mxu0 %vm264_vm2, %v2100_v30 }
  0x3b   :  { %2043 = vmatprep.mubr.msk.bf16.mxu0 %vm264_vm2, %v2101_v31 }
  0x3c   :  { %2072 = vmatmul.mubr.msk.bf16.gmra.mrb[24].mxu1 %vm264_vm2, %v2116_v35 }
  0x3d   :  { %2075 = vmatprep.mubr.msk.bf16.mxu1 %vm264_vm2, %v2117_v36 }
  0x42   :  { %2044 = vmatmul.mubr.msk.bf16.gmra.mrb[28].mxu0 %vm264_vm2, %v2102_v34 }
  0x44   :  { %2076 = vmatmul.mubr.msk.bf16.gmra.mrb[28].mxu1 %vm264_vm2, %v2118_v37 }
  0xdd   :  { %v2017_v39 = vpop.f32.mrb[0].mxu0  ;;  %v2333_v9 = vpop.f32.mrb[0].mxu1 }
  0xde   :  { %v411_v40 = vadd.f32 %v2017_v39, %v2308_v38  ;;  %v402_v41 = vpop.f32.mrb[1].mxu0  ;;  %v2336_v13 = vpop.f32.mrb[1].mxu1 }
  0xdf   :  { %v403_v42 = vadd.f32 %v2308_v38, %v402_v41  ;;  %v2018_v43 = vpop.f32.mrb[2].mxu0  ;;  %v2339_v18 = vpop.f32.mrb[2].mxu1 }
  0xe0   :  { %vm659_vm3 = vcmp.ge.f32.partialorder %v411_v40, 0.0  ;;  %v723_v44 = vmul.f32 0.01, %v411_v40  ;;  %v414_v45 = vadd.f32 %v2018_v43, %v2308_v38  ;;  %v405_v46 = vpop.f32.mrb[3].mxu0  ;;  %v2346_v22 = vpop.f32.mrb[3].mxu1 }
  0xe1   :  { %vm657_vm6 = vcmp.ge.f32.partialorder %v403_v42, 0.0  ;;  %v721_v47 = vmul.f32 0.01, %v403_v42  ;;  %v406_v50 = vadd.f32 %v2308_v38, %v405_v46 }
  0xe2   :  { %v787_v48 = vsel %vm659_vm3, %v411_v40, %v723_v44  ;;  %vm660_vm7 = vcmp.ge.f32.partialorder %v414_v45, 0.0  ;;  %v724_v49 = vmul.f32 0.01, %v414_v45 }
  0xe3   :  { %v1915_v51 = vpack.c.bf16 %v787_v48, %v787_v48  ;;  %v1565_v52 = vmul.f32 %v787_v48, %v787_v48  ;;  %v785_v53 = vsel %vm657_vm6, %v403_v42, %v721_v47  ;;  %v1433_v56 = vsel %vm1429_vm5, %v787_v48, 0.0 }
  0xe4   :  { %v1913_v54 = vpack.c.bf16 %v785_v53, %v785_v53  ;;  %v788_v55 = vsel %vm660_vm7, %v414_v45, %v724_v49  ;;  %v1430_v57 = vsel %vm1429_vm5, %v785_v53, 0.0  ;;  %v1563_v60 = vmul.f32 %v785_v53, %v785_v53 }
  0xe5   :  { %1108 = vst.msk [vmem:[%s2910_s3 + $0x8] sm:$0xf] %vm1105_vm4, %v1915_v51  ;;  %v1916_v58 = vpack.c.bf16 %v788_v55, %v788_v55  ;;  %v2021_v59 = vpop.f32.mrb[4].mxu0  ;;  %vm658_vm8 = vcmp.ge.f32.partialorder %v406_v50, 0.0  ;;  %v722_v61 = vmul.f32 0.01, %v406_v50  ;;  %v1566_v2 = vmul.f32 %v788_v55, %v788_v55 }
  0xe6   :  { %1106 = vst.msk [vmem:[%s2910_s3] sm:$0xf] %vm1105_vm4, %v1913_v54  ;;  %v427_v62 = vadd.f32 %v2021_v59, %v2308_v38  ;;  %v418_v63 = vpop.f32.mrb[5].mxu0  ;;  %v1630_v0 = vsel %vm1429_vm5, %v1565_v52, 0.0  ;;  %v1435_v1 = vsel %vm1429_vm5, %v788_v55, 0.0  ;;  %v1627_v14 = vsel %vm1429_vm5, %v1563_v60, 0.0 }
  0xe7   :  { %1109 = vst.msk [vmem:[%s2910_s3 + $0xc] sm:$0xf] %vm1105_vm4, %v1916_v58  ;;  %v419_v3 = vadd.f32 %v2308_v38, %v418_v63  ;;  %v2022_v4 = vpop.f32.mrb[6].mxu0  ;;  %v786_v5 = vsel %vm658_vm8, %v406_v50, %v722_v61  ;;  %v1632_v27 = vsel %vm1429_vm5, %v1566_v2, 0.0  ;;  %v2362_v47 = vpop.f32.mrb[4].mxu1 }
  0xe8   :  { %vm663_vm9 = vcmp.ge.f32.partialorder %v427_v62, 0.0  ;;  %v727_v6 = vmul.f32 0.01, %v427_v62  ;;  %v430_v7 = vadd.f32 %v2022_v4, %v2308_v38  ;;  %v421_v8 = vpop.f32.mrb[7].mxu0  ;;  %v1914_v10 = vpack.c.bf16 %v786_v5, %v786_v5  ;;  %v2371_v52 = vpop.f32.mrb[5].mxu1 }
  0xe9   :  { %v1431_v11 = vsel %vm1429_vm5, %v786_v5, 0.0  ;;  %v1564_v12 = vmul.f32 %v786_v5, %v786_v5  ;;  %vm661_vm10 = vcmp.ge.f32.partialorder %v419_v3, 0.0  ;;  %v725_v17 = vmul.f32 0.01, %v419_v3 }
  0xea   :  { %v1432_v15 = vadd.f32 %v1431_v11, %v1430_v57  ;;  %v791_v16 = vsel %vm663_vm9, %v427_v62, %v727_v6  ;;  %1107 = vst.msk [vmem:[%s2910_s3 + $0x4] sm:$0xf] %vm1105_vm4, %v1914_v10  ;;  %vm664_vm11 = vcmp.ge.f32.partialorder %v430_v7, 0.0  ;;  %v728_v26 = vmul.f32 0.01, %v430_v7  ;;  %v2375_v57 = vpop.f32.mrb[6].mxu1 }
  0xeb   :  { %v1628_v19 = vsel %vm1429_vm5, %v1564_v12, 0.0  ;;  %v1919_v20 = vpack.c.bf16 %v791_v16, %v791_v16  ;;  %v1569_v21 = vmul.f32 %v791_v16, %v791_v16  ;;  %v789_v25 = vsel %vm661_vm10, %v419_v3, %v725_v17  ;;  %v2378_v61 = vpop.f32.mrb[7].mxu1 }
  0xec   :  { %v1434_v23 = vadd.f32 %v1433_v56, %v1432_v15  ;;  %v1629_v24 = vadd.f32 %v1628_v19, %v1627_v14  ;;  %v1917_v28 = vpack.c.bf16 %v789_v25, %v789_v25  ;;  %v1437_v29 = vsel %vm1429_vm5, %v789_v25, 0.0 }
  0xed   :  { %1112 = vst.msk [vmem:[%s2910_s3 + $0x18] sm:$0xf] %vm1105_vm4, %v1919_v20  ;;  %v1567_v30 = vmul.f32 %v789_v25, %v789_v25  ;;  %v2025_v31 = vpop.f32.mrb[8].mxu0  ;;  %v792_v34 = vsel %vm664_vm11, %v430_v7, %v728_v26  ;;  %v422_v35 = vadd.f32 %v2308_v38, %v421_v8  ;;  %v1441_v37 = vsel %vm1429_vm5, %v791_v16, 0.0 }
  0xee   :  { %v1631_v32 = vadd.f32 %v1630_v0, %v1629_v24  ;;  %v1436_v33 = vadd.f32 %v1435_v1, %v1434_v23  ;;  %v434_v36 = vpop.f32.mrb[9].mxu0  ;;  %v1638_v39 = vsel %vm1429_vm5, %v1569_v21, 0.0  ;;  %1110 = vst.msk [vmem:[%s2910_s3 + $0x10] sm:$0xf] %vm1105_vm4, %v1917_v28  ;;  %v1920_v41 = vpack.c.bf16 %v792_v34, %v792_v34 }
  0xef   :  { %v1634_v40 = vsel %vm1429_vm5, %v1567_v30, 0.0  ;;  %v2026_v42 = vpop.f32.mrb[10].mxu0  ;;  %vm662_vm12 = vcmp.ge.f32.partialorder %v422_v35, 0.0  ;;  %v726_v45 = vmul.f32 0.01, %v422_v35  ;;  %v1570_v48 = vmul.f32 %v792_v34, %v792_v34  ;;  %v2391_v23 = vpop.f32.mrb[8].mxu1 }
  0xf0   :  { %v1438_v43 = vadd.f32 %v1437_v29, %v1436_v33  ;;  %v1633_v44 = vadd.f32 %v1632_v27, %v1631_v32  ;;  %v437_v46 = vpop.f32.mrb[11].mxu0  ;;  %1113 = vst.msk [vmem:[%s2910_s3 + $0x1c] sm:$0xf] %vm1105_vm4, %v1920_v41  ;;  %v443_v49 = vadd.f32 %v2025_v31, %v2308_v38  ;;  %v435_v50 = vadd.f32 %v2308_v38, %v434_v36  ;;  %v2403_v27 = vpop.f32.mrb[9].mxu1 }
  0xf1   :  { %v446_v51 = vadd.f32 %v2026_v42, %v2308_v38  ;;  %v1443_v54 = vsel %vm1429_vm5, %v792_v34, 0.0  ;;  %v790_v55 = vsel %vm662_vm12, %v422_v35, %v726_v45  ;;  %v438_v56 = vadd.f32 %v2308_v38, %v437_v46  ;;  %v2406_v32 = vpop.f32.mrb[10].mxu1 }
  0xf2   :  { %v1635_v53 = vadd.f32 %v1634_v40, %v1633_v44  ;;  %v1918_v58 = vpack.c.bf16 %v790_v55, %v790_v55  ;;  %v1439_v59 = vsel %vm1429_vm5, %v790_v55, 0.0  ;;  %v1568_v60 = vmul.f32 %v790_v55, %v790_v55  ;;  %v2410_v36 = vpop.f32.mrb[11].mxu1 }
  0xf3   :  { %vm667_vm13 = vcmp.ge.f32.partialorder %v443_v49, 0.0  ;;  %v1440_v62 = vadd.f32 %v1439_v59, %v1438_v43  ;;  %v731_v63 = vmul.f32 0.01, %v443_v49  ;;  %vm665_vm14 = vcmp.ge.f32.partialorder %v435_v50, 0.0 }
  0xf4   :  { %v729_v0 = vmul.f32 0.01, %v435_v50  ;;  %v1640_v1 = vsel %vm1429_vm5, %v1570_v48, 0.0  ;;  %1111 = vst.msk [vmem:[%s2910_s3 + $0x14] sm:$0xf] %vm1105_vm4, %v1918_v58  ;;  %v1636_v2 = vsel %vm1429_vm5, %v1568_v60, 0.0  ;;  %v2388_v15 = vadd.f32 %v2333_v9, %v2308_v38 }
  0xf5   :  { %vm668_vm15 = vcmp.ge.f32.partialorder %v446_v51, 0.0  ;;  %v732_v3 = vmul.f32 0.01, %v446_v51  ;;  %v2029_v4 = vpop.f32.mrb[12].mxu0  ;;  %v1442_v5 = vadd.f32 %v1441_v37, %v1440_v62  ;;  %v1637_v6 = vadd.f32 %v1636_v2, %v1635_v53 }
  0xf6   :  { %v795_v7 = vsel %vm667_vm13, %v443_v49, %v731_v63  ;;  %v793_v8 = vsel %vm665_vm14, %v435_v50, %v729_v0  ;;  %v450_v10 = vpop.f32.mrb[13].mxu0  ;;  %vm666_vm0 = vcmp.ge.f32.partialorder %v438_v56, 0.0  ;;  %v730_v25 = vmul.f32 0.01, %v438_v56 }
  0xf7   :  { %v1923_v11 = vpack.c.bf16 %v795_v7, %v795_v7  ;;  %v1921_v12 = vpack.c.bf16 %v793_v8, %v793_v8  ;;  %v2030_v14 = vpop.f32.mrb[14].mxu0  ;;  %v1639_v16 = vadd.f32 %v1638_v39, %v1637_v6  ;;  %v1444_v17 = vadd.f32 %v1443_v54, %v1442_v5 }
  0xf8   :  { %v1445_v19 = vsel %vm1429_vm5, %v793_v8, 0.0  ;;  %v1571_v20 = vmul.f32 %v793_v8, %v793_v8  ;;  %v453_v21 = vpop.f32.mrb[15].mxu0  ;;  %v1573_v24 = vmul.f32 %v795_v7, %v795_v7  ;;  %v796_v9 = vsel %vm668_vm15, %v446_v51, %v732_v3 }
  0xf9   :  { %1116 = vst.msk [vmem:[%s2910_s3 + $0x28] sm:$0xf] %vm1105_vm4, %v1923_v11  ;;  %1114 = vst.msk [vmem:[%s2910_s3 + $0x20] sm:$0xf] %vm1105_vm4, %v1921_v12  ;;  %v459_v26 = vadd.f32 %v2029_v4, %v2308_v38  ;;  %v1446_v28 = vadd.f32 %v1445_v19, %v1444_v17  ;;  %v1641_v29 = vadd.f32 %v1640_v1, %v1639_v16  ;;  %v1449_v33 = vsel %vm1429_vm5, %v795_v7, 0.0  ;;  %v2430_v1 = vpop.f32.mrb[12].mxu1 }
  0xfa   :  { %v1642_v30 = vsel %vm1429_vm5, %v1571_v20, 0.0  ;;  %v1924_v31 = vpack.c.bf16 %v796_v9, %v796_v9  ;;  %v1574_v34 = vmul.f32 %v796_v9, %v796_v9  ;;  %v794_v35 = vsel %vm666_vm0, %v438_v56, %v730_v25  ;;  %v2432_v5 = vpop.f32.mrb[13].mxu1 }
  0xfb   :  { %vm671_vm1 = vcmp.ge.f32.partialorder %v459_v26, 0.0  ;;  %v1643_v37 = vadd.f32 %v1642_v30, %v1641_v29  ;;  %v1922_v39 = vpack.c.bf16 %v794_v35, %v794_v35  ;;  %v1447_v40 = vsel %vm1429_vm5, %v794_v35, 0.0 }
  0xfc   :  { %1117 = vst.msk [vmem:[%s2910_s3 + $0x2c] sm:$0xf] %vm1105_vm4, %v1924_v31  ;;  %v1572_v41 = vmul.f32 %v794_v35, %v794_v35  ;;  %v1646_v42 = vsel %vm1429_vm5, %v1573_v24, 0.0  ;;  %v1448_v43 = vadd.f32 %v1447_v40, %v1446_v28  ;;  %v735_v44 = vmul.f32 0.01, %v459_v26 }
  0xfd   :  { %v451_v45 = vadd.f32 %v2308_v38, %v450_v10  ;;  %v2033_v46 = vpop.f32.mrb[16].mxu0  ;;  %v1451_v48 = vsel %vm1429_vm5, %v796_v9, 0.0  ;;  %1115 = vst.msk [vmem:[%s2910_s3 + $0x24] sm:$0xf] %vm1105_vm4, %v1922_v39  ;;  %v462_v50 = vadd.f32 %v2030_v14, %v2308_v38  ;;  %v454_v51 = vadd.f32 %v2308_v38, %v453_v21  ;;  %v2438_v10 = vpop.f32.mrb[14].mxu1 }
  0xfe   :  { %v1644_v49 = vsel %vm1429_vm5, %v1572_v41, 0.0  ;;  %v466_v53 = vpop.f32.mrb[17].mxu0  ;;  %v1450_v54 = vadd.f32 %v1449_v33, %v1448_v43  ;;  %v799_v56 = vsel %vm671_vm1, %v459_v26, %v735_v44  ;;  %v1648_v59 = vsel %vm1429_vm5, %v1574_v34, 0.0  ;;  %v2441_v17 = vpop.f32.mrb[15].mxu1 }
  0xff   :  { %v1645_v55 = vadd.f32 %v1644_v49, %v1643_v37  ;;  %vm669_vm2 = vcmp.ge.f32.partialorder %v451_v45, 0.0  ;;  %v2034_v58 = vpop.f32.mrb[18].mxu0  ;;  %v1927_v60 = vpack.c.bf16 %v799_v56, %v799_v56  ;;  %v733_v62 = vmul.f32 0.01, %v451_v45 }
 0x100   :  { %v475_v63 = vadd.f32 %v2033_v46, %v2308_v38  ;;  %v469_v0 = vpop.f32.mrb[19].mxu0  ;;  %v1452_v3 = vadd.f32 %v1451_v48, %v1450_v54  ;;  %vm672_vm3 = vcmp.ge.f32.partialorder %v462_v50, 0.0  ;;  %v736_v4 = vmul.f32 0.01, %v462_v50  ;;  %v2465_v48 = vpop.f32.mrb[16].mxu1 }
 0x101   :  { %v1647_v2 = vadd.f32 %v1646_v42, %v1645_v55  ;;  %1120 = vst.msk [vmem:[%s2910_s3 + $0x38] sm:$0xf] %vm1105_vm4, %v1927_v60  ;;  %v1577_v6 = vmul.f32 %v799_v56, %v799_v56  ;;  %v797_v7 = vsel %vm669_vm2, %v451_v45, %v733_v62  ;;  %vm670_vm6 = vcmp.ge.f32.partialorder %v454_v51, 0.0 }
 0x102   :  { %v734_v8 = vmul.f32 0.01, %v454_v51  ;;  %v1925_v11 = vpack.c.bf16 %v797_v7, %v797_v7  ;;  %v1453_v12 = vsel %vm1429_vm5, %v797_v7, 0.0  ;;  %v1575_v14 = vmul.f32 %v797_v7, %v797_v7 }
 0x103   :  { %v1649_v16 = vadd.f32 %v1648_v59, %v1647_v2  ;;  %v1457_v19 = vsel %vm1429_vm5, %v799_v56, 0.0  ;;  %v1454_v20 = vadd.f32 %v1453_v12, %v1452_v3  ;;  %v800_v21 = vsel %vm672_vm3, %v462_v50, %v736_v4 }
 0x104   :  { %v798_v24 = vsel %vm670_vm6, %v454_v51, %v734_v8  ;;  %1118 = vst.msk [vmem:[%s2910_s3 + $0x30] sm:$0xf] %vm1105_vm4, %v1925_v11  ;;  %v1650_v9 = vsel %vm1429_vm5, %v1575_v14, 0.0  ;;  %v1928_v25 = vpack.c.bf16 %v800_v21, %v800_v21  ;;  %v1578_v26 = vmul.f32 %v800_v21, %v800_v21 }
 0x105   :  { %vm675_vm7 = vcmp.ge.f32.partialorder %v475_v63, 0.0  ;;  %v2037_v28 = vpop.f32.mrb[20].mxu0  ;;  %v1651_v29 = vadd.f32 %v1650_v9, %v1649_v16  ;;  %v1926_v30 = vpack.c.bf16 %v798_v24, %v798_v24  ;;  %v1455_v31 = vsel %vm1429_vm5, %v798_v24, 0.0 }
 0x106   :  { %v1576_v33 = vmul.f32 %v798_v24, %v798_v24  ;;  %v482_v34 = vpop.f32.mrb[21].mxu0  ;;  %v1654_v35 = vsel %vm1429_vm5, %v1577_v6, 0.0  ;;  %1121 = vst.msk [vmem:[%s2910_s3 + $0x3c] sm:$0xf] %vm1105_vm4, %v1928_v25  ;;  %v1456_v37 = vadd.f32 %v1455_v31, %v1454_v20  ;;  %v739_v39 = vmul.f32 0.01, %v475_v63 }
 0x107   :  { %v467_v40 = vadd.f32 %v2308_v38, %v466_v53  ;;  %v2038_v41 = vpop.f32.mrb[22].mxu0  ;;  %v1459_v42 = vsel %vm1429_vm5, %v800_v21, 0.0  ;;  %1119 = vst.msk [vmem:[%s2910_s3 + $0x34] sm:$0xf] %vm1105_vm4, %v1926_v30  ;;  %v478_v44 = vadd.f32 %v2034_v58, %v2308_v38  ;;  %v470_v45 = vadd.f32 %v2308_v38, %v469_v0  ;;  %v2468_v53 = vpop.f32.mrb[17].mxu1 }
 0x108   :  { %v1652_v43 = vsel %vm1429_vm5, %v1576_v33, 0.0  ;;  %v485_v46 = vpop.f32.mrb[23].mxu0  ;;  %v1458_v49 = vadd.f32 %v1457_v19, %v1456_v37  ;;  %v803_v51 = vsel %vm675_vm7, %v475_v63, %v739_v39  ;;  %v1656_v54 = vsel %vm1429_vm5, %v1578_v26, 0.0  ;;  %v2472_v60 = vpop.f32.mrb[18].mxu1 }
 0x109   :  { %v1653_v50 = vadd.f32 %v1652_v43, %v1651_v29  ;;  %vm673_vm8 = vcmp.ge.f32.partialorder %v467_v40, 0.0  ;;  %v1931_v55 = vpack.c.bf16 %v803_v51, %v803_v51  ;;  %v737_v56 = vmul.f32 0.01, %v467_v40  ;;  %v2474_v2 = vpop.f32.mrb[19].mxu1 }
 0x10a   :  { %v491_v59 = vadd.f32 %v2037_v28, %v2308_v38  ;;  %v1460_v62 = vadd.f32 %v1459_v42, %v1458_v49  ;;  %vm676_vm9 = vcmp.ge.f32.partialorder %v478_v44, 0.0  ;;  %v740_v0 = vmul.f32 0.01, %v478_v44 }
 0x10b   :  { %v1655_v58 = vadd.f32 %v1654_v35, %v1653_v50  ;;  %1124 = vst.msk [vmem:[%s2910_s3 + $0x48] sm:$0xf] %vm1105_vm4, %v1931_v55  ;;  %v1581_v63 = vmul.f32 %v803_v51, %v803_v51  ;;  %v801_v3 = vsel %vm673_vm8, %v467_v40, %v737_v56  ;;  %vm674_vm10 = vcmp.ge.f32.partialorder %v470_v45, 0.0  ;;  %v2494_v35 = vpop.f32.mrb[20].mxu1 }
 0x10c   :  { %v738_v4 = vmul.f32 0.01, %v470_v45  ;;  %v1929_v6 = vpack.c.bf16 %v801_v3, %v801_v3  ;;  %v1461_v7 = vsel %vm1429_vm5, %v801_v3, 0.0  ;;  %v1579_v8 = vmul.f32 %v801_v3, %v801_v3  ;;  %v2502_v43 = vpop.f32.mrb[21].mxu1 }
 0x10d   :  { %v1657_v11 = vadd.f32 %v1656_v54, %v1655_v58  ;;  %v2041_v12 = vpop.f32.mrb[24].mxu0  ;;  %v1465_v14 = vsel %vm1429_vm5, %v803_v51, 0.0  ;;  %v1462_v16 = vadd.f32 %v1461_v7, %v1460_v62  ;;  %v804_v19 = vsel %vm676_vm9, %v478_v44, %v740_v0  ;;  %v2512_v51 = vpop.f32.mrb[22].mxu1 }
 0x10e   :  { %v802_v20 = vsel %vm674_vm10, %v470_v45, %v738_v4  ;;  %v2482_v21 = vpop.f32.mrb[25].mxu0  ;;  %1122 = vst.msk [vmem:[%s2910_s3 + $0x40] sm:$0xf] %vm1105_vm4, %v1929_v6  ;;  %v1658_v24 = vsel %vm1429_vm5, %v1579_v8, 0.0  ;;  %v1932_v9 = vpack.c.bf16 %v804_v19, %v804_v19  ;;  %v1582_v25 = vmul.f32 %v804_v19, %v804_v19  ;;  %v2515_v56 = vpop.f32.mrb[23].mxu1 }
 0x10f   :  { %vm679_vm11 = vcmp.ge.f32.partialorder %v491_v59, 0.0  ;;  %v2489_v26 = vpop.f32.mrb[26].mxu0  ;;  %v1659_v28 = vadd.f32 %v1658_v24, %v1657_v11  ;;  %v1930_v29 = vpack.c.bf16 %v802_v20, %v802_v20  ;;  %v1463_v30 = vsel %vm1429_vm5, %v802_v20, 0.0 }
 0x110   :  { %v1580_v31 = vmul.f32 %v802_v20, %v802_v20  ;;  %v2492_v33 = vpop.f32.mrb[27].mxu0  ;;  %v1662_v37 = vsel %vm1429_vm5, %v1581_v63, 0.0  ;;  %1125 = vst.msk [vmem:[%s2910_s3 + $0x4c] sm:$0xf] %vm1105_vm4, %v1932_v9  ;;  %v1464_v39 = vadd.f32 %v1463_v30, %v1462_v16  ;;  %v743_v40 = vmul.f32 0.01, %v491_v59 }
 0x111   :  { %v483_v42 = vadd.f32 %v2308_v38, %v482_v34  ;;  %v1467_v44 = vsel %vm1429_vm5, %v804_v19, 0.0  ;;  %1123 = vst.msk [vmem:[%s2910_s3 + $0x44] sm:$0xf] %vm1105_vm4, %v1930_v29  ;;  %v494_v49 = vadd.f32 %v2038_v41, %v2308_v38  ;;  %v486_v50 = vadd.f32 %v2308_v38, %v485_v46  ;;  %v2532_v29 = vpop.f32.mrb[24].mxu1 }
 0x112   :  { %v1660_v45 = vsel %vm1429_vm5, %v1580_v31, 0.0  ;;  %v1466_v54 = vadd.f32 %v1465_v14, %v1464_v39  ;;  %v807_v34 = vsel %vm679_vm11, %v491_v59, %v743_v40  ;;  %v1664_v58 = vsel %vm1429_vm5, %v1582_v25, 0.0  ;;  %v2539_v39 = vpop.f32.mrb[25].mxu1 }
 0x113   :  { %v1661_v55 = vadd.f32 %v1660_v45, %v1659_v28  ;;  %vm677_vm12 = vcmp.ge.f32.partialorder %v483_v42, 0.0  ;;  %v1935_v62 = vpack.c.bf16 %v807_v34, %v807_v34  ;;  %v741_v0 = vmul.f32 0.01, %v483_v42 }
 0x114   :  { %v507_v63 = vadd.f32 %v2041_v12, %v2308_v38  ;;  %v1468_v4 = vadd.f32 %v1467_v44, %v1466_v54  ;;  %vm680_vm13 = vcmp.ge.f32.partialorder %v494_v49, 0.0  ;;  %v744_v41 = vmul.f32 0.01, %v494_v49 }
 0x115   :  { %v1663_v3 = vadd.f32 %v1662_v37, %v1661_v55  ;;  %v2045_v46 = vpop.f32.mrb[28].mxu0  ;;  %1128 = vst.msk [vmem:[%s2910_s3 + $0x58] sm:$0xf] %vm1105_vm4, %v1935_v62  ;;  %v1585_v59 = vmul.f32 %v807_v34, %v807_v34  ;;  %v805_v6 = vsel %vm677_vm12, %v483_v42, %v741_v0  ;;  %vm678_vm14 = vcmp.ge.f32.partialorder %v486_v50, 0.0 }
 0x116   :  { %v742_v7 = vmul.f32 0.01, %v486_v50  ;;  %v2523_v8 = vpop.f32.mrb[29].mxu0  ;;  %v1933_v11 = vpack.c.bf16 %v805_v6, %v805_v6  ;;  %v1469_v14 = vsel %vm1429_vm5, %v805_v6, 0.0  ;;  %v1583_v12 = vmul.f32 %v805_v6, %v805_v6 }
 0x117   :  { %v1665_v16 = vadd.f32 %v1664_v58, %v1663_v3  ;;  %v2526_v19 = vpop.f32.mrb[30].mxu0  ;;  %v1473_v20 = vsel %vm1429_vm5, %v807_v34, 0.0  ;;  %v1470_v24 = vadd.f32 %v1469_v14, %v1468_v4  ;;  %v808_v9 = vsel %vm680_vm13, %v494_v49, %v744_v41  ;;  %v2542_v49 = vpop.f32.mrb[26].mxu1 }
 0x118   :  { %v806_v25 = vsel %vm678_vm14, %v486_v50, %v742_v7  ;;  %v2530_v28 = vpop.f32.mrb[31].mxu0  ;;  %1126 = vst.msk [vmem:[%s2910_s3 + $0x50] sm:$0xf] %vm1105_vm4, %v1933_v11  ;;  %v1666_v30 = vsel %vm1429_vm5, %v1583_v12, 0.0  ;;  %v1936_v31 = vpack.c.bf16 %v808_v9, %v808_v9  ;;  %v1586_v37 = vmul.f32 %v808_v9, %v808_v9  ;;  %v2551_v58 = vpop.f32.mrb[27].mxu1 }
 0x119   :  { %vm683_vm15 = vcmp.ge.f32.partialorder %v507_v63, 0.0  ;;  %v1667_v40 = vadd.f32 %v1666_v30, %v1665_v16  ;;  %v1934_v42 = vpack.c.bf16 %v806_v25, %v806_v25  ;;  %v1471_v44 = vsel %vm1429_vm5, %v806_v25, 0.0 }
 0x11a   :  { %v1584_v45 = vmul.f32 %v806_v25, %v806_v25  ;;  %v1670_v50 = vsel %vm1429_vm5, %v1585_v59, 0.0  ;;  %1129 = vst.msk [vmem:[%s2910_s3 + $0x5c] sm:$0xf] %vm1105_vm4, %v1936_v31  ;;  %v1472_v54 = vadd.f32 %v1471_v44, %v1470_v24  ;;  %v747_v55 = vmul.f32 0.01, %v507_v63 }
 0x11b   :  { %v499_v34 = vadd.f32 %v2308_v38, %v2482_v21  ;;  %v1475_v62 = vsel %vm1429_vm5, %v808_v9, 0.0  ;;  %1127 = vst.msk [vmem:[%s2910_s3 + $0x54] sm:$0xf] %vm1105_vm4, %v1934_v42  ;;  %v510_v3 = vadd.f32 %v2489_v26, %v2308_v38  ;;  %v502_v4 = vadd.f32 %v2308_v38, %v2492_v33 }
 0x11c   :  { %v1668_v0 = vsel %vm1429_vm5, %v1584_v45, 0.0  ;;  %v1474_v41 = vadd.f32 %v1473_v20, %v1472_v54  ;;  %v811_v21 = vsel %vm683_vm15, %v507_v63, %v747_v55  ;;  %v1672_v6 = vsel %vm1429_vm5, %v1586_v37, 0.0  ;;  %v2570_v20 = vpop.f32.mrb[28].mxu1 }
 0x11d   :  { %v1669_v59 = vadd.f32 %v1668_v0, %v1667_v40  ;;  %vm681_vm0 = vcmp.ge.f32.partialorder %v499_v34, 0.0  ;;  %v1939_v7 = vpack.c.bf16 %v811_v21, %v811_v21  ;;  %v745_v11 = vmul.f32 0.01, %v499_v34  ;;  %v2573_v31 = vpop.f32.mrb[29].mxu1 }
 0x11e   :  { %v523_v14 = vadd.f32 %v2045_v46, %v2308_v38  ;;  %v1476_v16 = vadd.f32 %v1475_v62, %v1474_v41  ;;  %vm684_vm1 = vcmp.ge.f32.partialorder %v510_v3, 0.0  ;;  %v748_v24 = vmul.f32 0.01, %v510_v3  ;;  %v2576_v45 = vpop.f32.mrb[30].mxu1 }
 0x11f   :  { %v1671_v12 = vadd.f32 %v1670_v50, %v1669_v59  ;;  %1132 = vst.msk [vmem:[%s2910_s3 + $0x68] sm:$0xf] %vm1105_vm4, %v1939_v7  ;;  %v1589_v26 = vmul.f32 %v811_v21, %v811_v21  ;;  %v809_v33 = vsel %vm681_vm0, %v499_v34, %v745_v11  ;;  %vm682_vm2 = vcmp.ge.f32.partialorder %v502_v4, 0.0  ;;  %v2583_v34 = vpop.f32.mrb[31].mxu1 }
 0x120   :  { %v746_v63 = vmul.f32 0.01, %v502_v4  ;;  %v1937_v9 = vpack.c.bf16 %v809_v33, %v809_v33  ;;  %v1477_v25 = vsel %vm1429_vm5, %v809_v33, 0.0  ;;  %v1587_v30 = vmul.f32 %v809_v33, %v809_v33 }
 0x121   :  { %v1673_v46 = vadd.f32 %v1672_v6, %v1671_v12  ;;  %v1481_v37 = vsel %vm1429_vm5, %v811_v21, 0.0  ;;  %v1478_v40 = vadd.f32 %v1477_v25, %v1476_v16  ;;  %v812_v42 = vsel %vm684_vm1, %v510_v3, %v748_v24 }
 0x122   :  { %v810_v44 = vsel %vm682_vm2, %v502_v4, %v746_v63  ;;  %1130 = vst.msk [vmem:[%s2910_s3 + $0x60] sm:$0xf] %vm1105_vm4, %v1937_v9  ;;  %v1674_v50 = vsel %vm1429_vm5, %v1587_v30, 0.0  ;;  %v1940_v54 = vpack.c.bf16 %v812_v42, %v812_v42  ;;  %v1590_v55 = vmul.f32 %v812_v42, %v812_v42 }
 0x123   :  { %vm687_vm3 = vcmp.ge.f32.partialorder %v523_v14, 0.0  ;;  %v1675_v62 = vadd.f32 %v1674_v50, %v1673_v46  ;;  %v1938_v0 = vpack.c.bf16 %v810_v44, %v810_v44  ;;  %v1479_v41 = vsel %vm1429_vm5, %v810_v44, 0.0 }
 0x124   :  { %v1588_v3 = vmul.f32 %v810_v44, %v810_v44  ;;  %v1678_v4 = vsel %vm1429_vm5, %v1589_v26, 0.0  ;;  %1133 = vst.msk [vmem:[%s2910_s3 + $0x6c] sm:$0xf] %vm1105_vm4, %v1940_v54  ;;  %v1480_v59 = vadd.f32 %v1479_v41, %v1478_v40  ;;  %v751_v21 = vmul.f32 0.01, %v523_v14 }
 0x125   :  { %v515_v6 = vadd.f32 %v2308_v38, %v2523_v8  ;;  %v1483_v7 = vsel %vm1429_vm5, %v812_v42, 0.0  ;;  %1131 = vst.msk [vmem:[%s2910_s3 + $0x64] sm:$0xf] %vm1105_vm4, %v1938_v0  ;;  %v526_v12 = vadd.f32 %v2526_v19, %v2308_v38  ;;  %v518_v16 = vadd.f32 %v2308_v38, %v2530_v28 }
 0x126   :  { %v1676_v11 = vsel %vm1429_vm5, %v1588_v3, 0.0  ;;  %v1482_v24 = vadd.f32 %v1481_v37, %v1480_v59  ;;  %v815_v33 = vsel %vm687_vm3, %v523_v14, %v751_v21  ;;  %v1680_v8 = vsel %vm1429_vm5, %v1590_v55, 0.0 }
 0x127   :  { %v1677_v26 = vadd.f32 %v1676_v11, %v1675_v62  ;;  %vm685_vm6 = vcmp.ge.f32.partialorder %v515_v6, 0.0  ;;  %v1943_v63 = vpack.c.bf16 %v815_v33, %v815_v33  ;;  %v749_v9 = vmul.f32 0.01, %v515_v6 }
 0x128   :  { %vm691_vm7 = vcmp.ge.f32.partialorder %v2388_v15, 0.0  ;;  %v1484_v30 = vadd.f32 %v1483_v7, %v1482_v24  ;;  %vm688_vm8 = vcmp.ge.f32.partialorder %v526_v12, 0.0  ;;  %v752_v46 = vmul.f32 0.01, %v526_v12 }
 0x129   :  { %v1679_v25 = vadd.f32 %v1678_v4, %v1677_v26  ;;  %1136 = vst.msk [vmem:[%s2910_s3 + $0x78] sm:$0xf] %vm1105_vm4, %v1943_v63  ;;  %v1593_v19 = vmul.f32 %v815_v33, %v815_v33  ;;  %v813_v28 = vsel %vm685_vm6, %v515_v6, %v749_v9  ;;  %vm686_vm9 = vcmp.ge.f32.partialorder %v518_v16, 0.0 }
 0x12a   :  { %v750_v14 = vmul.f32 0.01, %v518_v16  ;;  %v1941_v37 = vpack.c.bf16 %v813_v28, %v813_v28  ;;  %v1485_v40 = vsel %vm1429_vm5, %v813_v28, 0.0  ;;  %v1591_v42 = vmul.f32 %v813_v28, %v813_v28 }
 0x12b   :  { %v1681_v44 = vadd.f32 %v1680_v8, %v1679_v25  ;;  %v1486_v50 = vadd.f32 %v1485_v40, %v1484_v30  ;;  %v816_v54 = vsel %vm688_vm8, %v526_v12, %v752_v46  ;;  %v755_v62 = vmul.f32 0.01, %v2388_v15 }
 0x12c   :  { %v814_v55 = vsel %vm686_vm9, %v518_v16, %v750_v14  ;;  %v1489_v0 = vsel %vm1429_vm5, %v815_v33, 0.0  ;;  %1134 = vst.msk [vmem:[%s2910_s3 + $0x70] sm:$0xf] %vm1105_vm4, %v1941_v37  ;;  %v1682_v41 = vsel %vm1429_vm5, %v1591_v42, 0.0  ;;  %v1944_v3 = vpack.c.bf16 %v816_v54, %v816_v54 }
 0x12d   :  { %v1594_v4 = vmul.f32 %v816_v54, %v816_v54  ;;  %v1683_v59 = vadd.f32 %v1682_v41, %v1681_v44  ;;  %v1942_v21 = vpack.c.bf16 %v814_v55, %v814_v55  ;;  %v1487_v6 = vsel %vm1429_vm5, %v814_v55, 0.0 }
 0x12e   :  { %v1592_v7 = vmul.f32 %v814_v55, %v814_v55  ;;  %v1686_v11 = vsel %vm1429_vm5, %v1593_v19, 0.0  ;;  %1137 = vst.msk [vmem:[%s2910_s3 + $0x7c] sm:$0xf] %vm1105_vm4, %v1944_v3  ;;  %v1488_v12 = vadd.f32 %v1487_v6, %v1486_v50  ;;  %v819_v16 = vsel %vm691_vm7, %v2388_v15, %v755_v62 }
 0x12f   :  { %v531_v24 = vadd.f32 %v2308_v38, %v2336_v13  ;;  %v1491_v26 = vsel %vm1429_vm5, %v816_v54, 0.0  ;;  %v1688_v33 = vsel %vm1429_vm5, %v1594_v4, 0.0  ;;  %1135 = vst.msk [vmem:[%s2910_s3 + $0x74] sm:$0xf] %vm1105_vm4, %v1942_v21  ;;  %v1947_v63 = vpack.c.bf16 %v819_v16, %v819_v16 }
 0x130   :  { %v1684_v8 = vsel %vm1429_vm5, %v1592_v7, 0.0  ;;  %v1490_v9 = vadd.f32 %v1489_v0, %v1488_v12  ;;  %v1597_v13 = vmul.f32 %v819_v16, %v819_v16  ;;  %v542_v15 = vadd.f32 %v2339_v18, %v2308_v38 }
 0x131   :  { %v1685_v25 = vadd.f32 %v1684_v8, %v1683_v59  ;;  %vm689_vm10 = vcmp.ge.f32.partialorder %v531_v24, 0.0  ;;  %v753_v30 = vmul.f32 0.01, %v531_v24  ;;  %1140 = vst.msk [vmem:[%s2910_s3 + $0x88] sm:$0xf] %vm1105_vm4, %v1947_v63  ;;  %v534_v46 = vadd.f32 %v2308_v38, %v2346_v22 }
 0x132   :  { %v555_v19 = vadd.f32 %v2362_v47, %v2308_v38  ;;  %v1492_v37 = vadd.f32 %v1491_v26, %v1490_v9  ;;  %v547_v40 = vadd.f32 %v2308_v38, %v2371_v52  ;;  %vm692_vm11 = vcmp.ge.f32.partialorder %v542_v15, 0.0 }
 0x133   :  { %v1687_v28 = vadd.f32 %v1686_v11, %v1685_v25  ;;  %v817_v14 = vsel %vm689_vm10, %v531_v24, %v753_v30  ;;  %v756_v18 = vmul.f32 0.01, %v542_v15  ;;  %vm690_vm12 = vcmp.ge.f32.partialorder %v534_v46, 0.0 }
 0x134   :  { %v1945_v42 = vpack.c.bf16 %v817_v14, %v817_v14  ;;  %v1493_v44 = vsel %vm1429_vm5, %v817_v14, 0.0  ;;  %v1595_v50 = vmul.f32 %v817_v14, %v817_v14  ;;  %v754_v47 = vmul.f32 0.01, %v534_v46 }
 0x135   :  { %v1494_v54 = vadd.f32 %v1493_v44, %v1492_v37  ;;  %v1689_v55 = vadd.f32 %v1688_v33, %v1687_v28  ;;  %vm695_vm13 = vcmp.ge.f32.partialorder %v555_v19, 0.0  ;;  %v759_v62 = vmul.f32 0.01, %v555_v19 }
 0x136   :  { %1138 = vst.msk [vmem:[%s2910_s3 + $0x80] sm:$0xf] %vm1105_vm4, %v1945_v42  ;;  %v1690_v22 = vsel %vm1429_vm5, %v1595_v50, 0.0  ;;  %v820_v0 = vsel %vm692_vm11, %v542_v15, %v756_v18  ;;  %v757_v41 = vmul.f32 0.01, %v547_v40  ;;  %v818_v59 = vsel %vm690_vm12, %v534_v46, %v754_v47 }
 0x137   :  { %v1691_v52 = vadd.f32 %v1690_v22, %v1689_v55  ;;  %v1948_v3 = vpack.c.bf16 %v820_v0, %v820_v0  ;;  %v1598_v4 = vmul.f32 %v820_v0, %v820_v0  ;;  %vm693_vm14 = vcmp.ge.f32.partialorder %v547_v40, 0.0 }
 0x138   :  { %v1946_v21 = vpack.c.bf16 %v818_v59, %v818_v59  ;;  %v1495_v6 = vsel %vm1429_vm5, %v818_v59, 0.0  ;;  %v1596_v7 = vmul.f32 %v818_v59, %v818_v59  ;;  %v823_v11 = vsel %vm695_vm13, %v555_v19, %v759_v62 }
 0x139   :  { %v1497_v12 = vsel %vm1429_vm5, %v819_v16, 0.0  ;;  %v1694_v24 = vsel %vm1429_vm5, %v1597_v13, 0.0  ;;  %1141 = vst.msk [vmem:[%s2910_s3 + $0x8c] sm:$0xf] %vm1105_vm4, %v1948_v3  ;;  %v1496_v26 = vadd.f32 %v1495_v6, %v1494_v54  ;;  %v1951_v33 = vpack.c.bf16 %v823_v11, %v823_v11 }
 0x13a   :  { %v1499_v8 = vsel %vm1429_vm5, %v820_v0, 0.0  ;;  %1139 = vst.msk [vmem:[%s2910_s3 + $0x84] sm:$0xf] %vm1105_vm4, %v1946_v21  ;;  %v1692_v63 = vsel %vm1429_vm5, %v1596_v7, 0.0  ;;  %v821_v9 = vsel %vm693_vm14, %v547_v40, %v757_v41  ;;  %v558_v16 = vadd.f32 %v2375_v57, %v2308_v38 }
 0x13b   :  { %v1696_v25 = vsel %vm1429_vm5, %v1598_v4, 0.0  ;;  %v1498_v30 = vadd.f32 %v1497_v12, %v1496_v26  ;;  %v1693_v13 = vadd.f32 %v1692_v63, %v1691_v52  ;;  %1144 = vst.msk [vmem:[%s2910_s3 + $0x98] sm:$0xf] %vm1105_vm4, %v1951_v33  ;;  %v1949_v15 = vpack.c.bf16 %v821_v9, %v821_v9  ;;  %v2704_v33 = vld [vmem:[%s2909_s2] ss:$0 sm:$0xff] }
 0x13c   :  { %v1505_v46 = vsel %vm1429_vm5, %v823_v11, 0.0  ;;  %v1599_v19 = vmul.f32 %v821_v9, %v821_v9  ;;  %vm696_vm15 = vcmp.ge.f32.partialorder %v558_v16, 0.0  ;;  %v760_v28 = vmul.f32 0.01, %v558_v16 }
 0x13d   :  { %v1695_v14 = vadd.f32 %v1694_v24, %v1693_v13  ;;  %1142 = vst.msk [vmem:[%s2910_s3 + $0x90] sm:$0xf] %vm1105_vm4, %v1949_v15  ;;  %v1500_v57 = vadd.f32 %v1499_v8, %v1498_v30  ;;  %v550_v37 = vadd.f32 %v2308_v38, %v2378_v61  ;;  %v571_v40 = vadd.f32 %v2391_v23, %v2308_v38 }
 0x13e   :  { %v1501_v42 = vsel %vm1429_vm5, %v821_v9, 0.0  ;;  %v824_v44 = vsel %vm696_vm15, %v558_v16, %v760_v28  ;;  %v563_v50 = vadd.f32 %v2308_v38, %v2403_v27  ;;  %v574_v54 = vadd.f32 %v2406_v32, %v2308_v38 }
 0x13f   :  { %v1601_v55 = vmul.f32 %v823_v11, %v823_v11  ;;  %v1502_v18 = vadd.f32 %v1501_v42, %v1500_v57  ;;  %v1697_v22 = vadd.f32 %v1696_v25, %v1695_v14  ;;  %v1952_v47 = vpack.c.bf16 %v824_v44, %v824_v44 }
 0x140   :  { %v1698_v62 = vsel %vm1429_vm5, %v1599_v19, 0.0  ;;  %vm694_vm0 = vcmp.ge.f32.partialorder %v550_v37, 0.0  ;;  %v758_v61 = vmul.f32 0.01, %v550_v37  ;;  %vm699_vm1 = vcmp.ge.f32.partialorder %v571_v40, 0.0 }
 0x141   :  { %v1699_v52 = vadd.f32 %v1698_v62, %v1697_v22  ;;  %1145 = vst.msk [vmem:[%s2910_s3 + $0x9c] sm:$0xf] %vm1105_vm4, %v1952_v47  ;;  %v1602_v23 = vmul.f32 %v824_v44, %v824_v44  ;;  %v763_v27 = vmul.f32 0.01, %v571_v40  ;;  %v761_v0 = vmul.f32 0.01, %v563_v50 }
 0x142   :  { %v822_v41 = vsel %vm694_vm0, %v550_v37, %v758_v61  ;;  %vm697_vm2 = vcmp.ge.f32.partialorder %v563_v50, 0.0  ;;  %vm700_vm3 = vcmp.ge.f32.partialorder %v574_v54, 0.0  ;;  %v764_v38 = vmul.f32 0.01, %v574_v54 }
 0x143   :  { %v1950_v32 = vpack.c.bf16 %v822_v41, %v822_v41  ;;  %v1503_v3 = vsel %vm1429_vm5, %v822_v41, 0.0  ;;  %v1600_v4 = vmul.f32 %v822_v41, %v822_v41  ;;  %v827_v59 = vsel %vm699_vm1, %v571_v40, %v763_v27 }
 0x144   :  { %v1702_v21 = vsel %vm1429_vm5, %v1601_v55, 0.0  ;;  %v1507_v6 = vsel %vm1429_vm5, %v824_v44, 0.0  ;;  %v1504_v7 = vadd.f32 %v1503_v3, %v1502_v18  ;;  %v1955_v11 = vpack.c.bf16 %v827_v59, %v827_v59 }
 0x145   :  { %1143 = vst.msk [vmem:[%s2910_s3 + $0x94] sm:$0xf] %vm1105_vm4, %v1950_v32  ;;  %v1700_v12 = vsel %vm1429_vm5, %v1600_v4, 0.0  ;;  %v825_v24 = vsel %vm697_vm2, %v563_v50, %v761_v0  ;;  %v828_v26 = vsel %vm700_vm3, %v574_v54, %v764_v38  ;;  %v566_v8 = vadd.f32 %v2704_v33, %v2410_v36 }
 0x146   :  { %v1704_v63 = vsel %vm1429_vm5, %v1602_v23, 0.0  ;;  %v1506_v9 = vadd.f32 %v1505_v46, %v1504_v7  ;;  %v1701_v16 = vadd.f32 %v1700_v12, %v1699_v52  ;;  %1148 = vst.msk [vmem:[%s2910_s3 + $0xa8] sm:$0xf] %vm1105_vm4, %v1955_v11  ;;  %v1953_v25 = vpack.c.bf16 %v825_v24, %v825_v24 }
 0x147   :  { %v1513_v30 = vsel %vm1429_vm5, %v827_v59, 0.0  ;;  %v1605_v13 = vmul.f32 %v827_v59, %v827_v59  ;;  %v1603_v15 = vmul.f32 %v825_v24, %v825_v24  ;;  %v1956_v19 = vpack.c.bf16 %v828_v26, %v828_v26 }
 0x148   :  { %v1703_v28 = vadd.f32 %v1702_v21, %v1701_v16  ;;  %1146 = vst.msk [vmem:[%s2910_s3 + $0xa0] sm:$0xf] %vm1105_vm4, %v1953_v25  ;;  %v1508_v36 = vadd.f32 %v1507_v6, %v1506_v9  ;;  %v1509_v46 = vsel %vm1429_vm5, %v825_v24, 0.0  ;;  %vm698_vm6 = vcmp.ge.f32.partialorder %v566_v8, 0.0 }
 0x149   :  { %1149 = vst.msk [vmem:[%s2910_s3 + $0xac] sm:$0xf] %vm1105_vm4, %v1956_v19  ;;  %v1606_v14 = vmul.f32 %v828_v26, %v828_v26  ;;  %v762_v57 = vmul.f32 0.01, %v566_v8  ;;  %v587_v37 = vadd.f32 %v2704_v33, %v2430_v1  ;;  %v579_v40 = vadd.f32 %v2704_v33, %v2432_v5 }
 0x14a   :  { %v1510_v42 = vadd.f32 %v1509_v46, %v1508_v36  ;;  %v1705_v44 = vadd.f32 %v1704_v63, %v1703_v28  ;;  %v1706_v50 = vsel %vm1429_vm5, %v1603_v15, 0.0  ;;  %v590_v54 = vadd.f32 %v2704_v33, %v2438_v10 }
 0x14b   :  { %v826_v55 = vsel %vm698_vm6, %v566_v8, %v762_v57  ;;  %vm703_vm7 = vcmp.ge.f32.partialorder %v587_v37, 0.0  ;;  %v767_v18 = vmul.f32 0.01, %v587_v37  ;;  %vm701_vm8 = vcmp.ge.f32.partialorder %v579_v40, 0.0 }
 0x14c   :  { %v1707_v22 = vadd.f32 %v1706_v50, %v1705_v44  ;;  %v1954_v47 = vpack.c.bf16 %v826_v55, %v826_v55  ;;  %v1511_v62 = vsel %vm1429_vm5, %v826_v55, 0.0  ;;  %v1604_v61 = vmul.f32 %v826_v55, %v826_v55 }
 0x14d   :  { %v1710_v1 = vsel %vm1429_vm5, %v1605_v13, 0.0  ;;  %v1512_v52 = vadd.f32 %v1511_v62, %v1510_v42  ;;  %v831_v5 = vsel %vm703_vm7, %v587_v37, %v767_v18  ;;  %v765_v23 = vmul.f32 0.01, %v579_v40 }
 0x14e   :  { %1147 = vst.msk [vmem:[%s2910_s3 + $0xa4] sm:$0xf] %vm1105_vm4, %v1954_v47  ;;  %v1708_v10 = vsel %vm1429_vm5, %v1604_v61, 0.0  ;;  %v1959_v27 = vpack.c.bf16 %v831_v5, %v831_v5  ;;  %v1609_v0 = vmul.f32 %v831_v5, %v831_v5  ;;  %vm704_vm9 = vcmp.ge.f32.partialorder %v590_v54, 0.0 }
 0x14f   :  { %v1514_v41 = vadd.f32 %v1513_v30, %v1512_v52  ;;  %v1709_v38 = vadd.f32 %v1708_v10, %v1707_v22  ;;  %v829_v32 = vsel %vm701_vm8, %v579_v40, %v765_v23  ;;  %v768_v3 = vmul.f32 0.01, %v590_v54 }
 0x150   :  { %v1515_v4 = vsel %vm1429_vm5, %v828_v26, 0.0  ;;  %v1712_v59 = vsel %vm1429_vm5, %v1606_v14, 0.0  ;;  %1152 = vst.msk [vmem:[%s2910_s3 + $0xb8] sm:$0xf] %vm1105_vm4, %v1959_v27  ;;  %v1957_v21 = vpack.c.bf16 %v829_v32, %v829_v32  ;;  %v1607_v6 = vmul.f32 %v829_v32, %v829_v32 }
 0x151   :  { %v1711_v7 = vadd.f32 %v1710_v1, %v1709_v38  ;;  %v1516_v11 = vadd.f32 %v1515_v4, %v1514_v41  ;;  %v832_v12 = vsel %vm704_vm9, %v590_v54, %v768_v3  ;;  %v582_v24 = vadd.f32 %v2704_v33, %v2441_v17 }
 0x152   :  { %v1521_v8 = vsel %vm1429_vm5, %v831_v5, 0.0  ;;  %v1718_v63 = vsel %vm1429_vm5, %v1609_v0, 0.0  ;;  %1150 = vst.msk [vmem:[%s2910_s3 + $0xb0] sm:$0xf] %vm1105_vm4, %v1957_v21  ;;  %v1517_v26 = vsel %vm1429_vm5, %v829_v32, 0.0  ;;  %v1960_v9 = vpack.c.bf16 %v832_v12, %v832_v12 }
 0x153   :  { %v1518_v16 = vadd.f32 %v1517_v26, %v1516_v11  ;;  %v1713_v25 = vadd.f32 %v1712_v59, %v1711_v7  ;;  %vm702_vm10 = vcmp.ge.f32.partialorder %v582_v24, 0.0  ;;  %v766_v30 = vmul.f32 0.01, %v582_v24 }
 0x154   :  { %v1714_v13 = vsel %vm1429_vm5, %v1607_v6, 0.0  ;;  %1153 = vst.msk [vmem:[%s2910_s3 + $0xbc] sm:$0xf] %vm1105_vm4, %v1960_v9  ;;  %v603_v17 = vadd.f32 %v2704_v33, %v2465_v48  ;;  %v595_v15 = vadd.f32 %v2704_v33, %v2468_v53  ;;  %v606_v19 = vadd.f32 %v2704_v33, %v2472_v60 }
 0x155   :  { %v1715_v28 = vadd.f32 %v1714_v13, %v1713_v25  ;;  %v1610_v36 = vmul.f32 %v832_v12, %v832_v12  ;;  %v830_v46 = vsel %vm702_vm10, %v582_v24, %v766_v30  ;;  %v598_v14 = vadd.f32 %v2704_v33, %v2474_v2 }
 0x156   :  { %v1958_v57 = vpack.c.bf16 %v830_v46, %v830_v46  ;;  %v1519_v37 = vsel %vm1429_vm5, %v830_v46, 0.0  ;;  %v1608_v40 = vmul.f32 %v830_v46, %v830_v46  ;;  %vm707_vm11 = vcmp.ge.f32.partialorder %v603_v17, 0.0 }
 0x157   :  { %v1520_v42 = vadd.f32 %v1519_v37, %v1518_v16  ;;  %v771_v44 = vmul.f32 0.01, %v603_v17  ;;  %vm705_vm12 = vcmp.ge.f32.partialorder %v595_v15, 0.0  ;;  %v769_v48 = vmul.f32 0.01, %v595_v15 }
 0x158   :  { %1151 = vst.msk [vmem:[%s2910_s3 + $0xb4] sm:$0xf] %vm1105_vm4, %v1958_v57  ;;  %v1716_v53 = vsel %vm1429_vm5, %v1608_v40, 0.0  ;;  %vm708_vm13 = vcmp.ge.f32.partialorder %v606_v19, 0.0  ;;  %v772_v60 = vmul.f32 0.01, %v606_v19  ;;  %v619_v2 = vadd.f32 %v2704_v33, %v2494_v35 }
 0x159   :  { %v1522_v50 = vadd.f32 %v1521_v8, %v1520_v42  ;;  %v1717_v54 = vadd.f32 %v1716_v53, %v1715_v28  ;;  %v835_v55 = vsel %vm707_vm11, %v603_v17, %v771_v44  ;;  %v833_v18 = vsel %vm705_vm12, %v595_v15, %v769_v48 }
 0x15a   :  { %v1523_v22 = vsel %vm1429_vm5, %v832_v12, 0.0  ;;  %v1720_v47 = vsel %vm1429_vm5, %v1610_v36, 0.0  ;;  %v1963_v62 = vpack.c.bf16 %v835_v55, %v835_v55  ;;  %v1961_v61 = vpack.c.bf16 %v833_v18, %v833_v18 }
 0x15b   :  { %v1719_v1 = vadd.f32 %v1718_v63, %v1717_v54  ;;  %v1524_v52 = vadd.f32 %v1523_v22, %v1522_v50  ;;  %v1611_v5 = vmul.f32 %v833_v18, %v833_v18  ;;  %vm706_vm14 = vcmp.ge.f32.partialorder %v598_v14, 0.0 }
 0x15c   :  { %1156 = vst.msk [vmem:[%s2910_s3 + $0xc8] sm:$0xf] %vm1105_vm4, %v1963_v62  ;;  %v1613_v35 = vmul.f32 %v835_v55, %v835_v55  ;;  %1154 = vst.msk [vmem:[%s2910_s3 + $0xc0] sm:$0xf] %vm1105_vm4, %v1961_v61  ;;  %v1525_v23 = vsel %vm1429_vm5, %v833_v18, 0.0  ;;  %v836_v10 = vsel %vm708_vm13, %v606_v19, %v772_v60  ;;  %vm711_vm15 = vcmp.ge.f32.partialorder %v619_v2, 0.0 }
 0x15d   :  { %v770_v27 = vmul.f32 0.01, %v598_v14  ;;  %v1526_v0 = vadd.f32 %v1525_v23, %v1524_v52  ;;  %v1721_v41 = vadd.f32 %v1720_v47, %v1719_v1  ;;  %v1964_v38 = vpack.c.bf16 %v836_v10, %v836_v10 }
 0x15e   :  { %v1722_v32 = vsel %vm1429_vm5, %v1611_v5, 0.0  ;;  %v1614_v3 = vmul.f32 %v836_v10, %v836_v10  ;;  %v775_v59 = vmul.f32 0.01, %v619_v2  ;;  %v1529_v12 = vsel %vm1429_vm5, %v835_v55, 0.0 }
 0x15f   :  { %v834_v4 = vsel %vm706_vm14, %v598_v14, %v770_v27  ;;  %v1723_v21 = vadd.f32 %v1722_v32, %v1721_v41  ;;  %1157 = vst.msk [vmem:[%s2910_s3 + $0xcc] sm:$0xf] %vm1105_vm4, %v1964_v38  ;;  %v611_v63 = vadd.f32 %v2704_v33, %v2502_v43  ;;  %v1726_v26 = vsel %vm1429_vm5, %v1613_v35, 0.0 }
 0x160   :  { %v1962_v6 = vpack.c.bf16 %v834_v4, %v834_v4  ;;  %v1527_v7 = vsel %vm1429_vm5, %v834_v4, 0.0  ;;  %v1612_v11 = vmul.f32 %v834_v4, %v834_v4  ;;  %v839_v8 = vsel %vm711_vm15, %v619_v2, %v775_v59 }
 0x161   :  { %v1528_v24 = vadd.f32 %v1527_v7, %v1526_v0  ;;  %v1531_v9 = vsel %vm1429_vm5, %v836_v10, 0.0  ;;  %v1967_v25 = vpack.c.bf16 %v839_v8, %v839_v8  ;;  %vm709_vm0 = vcmp.ge.f32.partialorder %v611_v63, 0.0 }
 0x162   :  { %1155 = vst.msk [vmem:[%s2910_s3 + $0xc4] sm:$0xf] %vm1105_vm4, %v1962_v6  ;;  %v1724_v16 = vsel %vm1429_vm5, %v1612_v11, 0.0  ;;  %v773_v17 = vmul.f32 0.01, %v611_v63  ;;  %v1728_v15 = vsel %vm1429_vm5, %v1614_v3, 0.0  ;;  %v622_v43 = vadd.f32 %v2704_v33, %v2512_v51 }
 0x163   :  { %v1530_v30 = vadd.f32 %v1529_v12, %v1528_v24  ;;  %v1725_v13 = vadd.f32 %v1724_v16, %v1723_v21  ;;  %1160 = vst.msk [vmem:[%s2910_s3 + $0xd8] sm:$0xf] %vm1105_vm4, %v1967_v25  ;;  %v614_v19 = vadd.f32 %v2704_v33, %v2515_v56  ;;  %v635_v28 = vadd.f32 %v2704_v33, %v2532_v29 }
 0x164   :  { %v837_v46 = vsel %vm709_vm0, %v611_v63, %v773_v17  ;;  %v627_v57 = vadd.f32 %v2704_v33, %v2539_v39  ;;  %vm712_vm1 = vcmp.ge.f32.partialorder %v622_v43, 0.0  ;;  %v776_v51 = vmul.f32 0.01, %v622_v43 }
 0x165   :  { %v1727_v36 = vadd.f32 %v1726_v26, %v1725_v13  ;;  %v1532_v14 = vadd.f32 %v1531_v9, %v1530_v30  ;;  %v1965_v37 = vpack.c.bf16 %v837_v46, %v837_v46  ;;  %v1533_v40 = vsel %vm1429_vm5, %v837_v46, 0.0 }
 0x166   :  { %v1615_v42 = vmul.f32 %v837_v46, %v837_v46  ;;  %vm710_vm2 = vcmp.ge.f32.partialorder %v614_v19, 0.0  ;;  %v774_v29 = vmul.f32 0.01, %v614_v19  ;;  %vm715_vm3 = vcmp.ge.f32.partialorder %v635_v28, 0.0 }
 0x167   :  { %v1534_v44 = vadd.f32 %v1533_v40, %v1532_v14  ;;  %v1729_v48 = vadd.f32 %v1728_v15, %v1727_v36  ;;  %1158 = vst.msk [vmem:[%s2910_s3 + $0xd0] sm:$0xf] %vm1105_vm4, %v1965_v37  ;;  %v779_v53 = vmul.f32 0.01, %v635_v28  ;;  %v1617_v39 = vmul.f32 %v839_v8, %v839_v8 }
 0x168   :  { %v1730_v56 = vsel %vm1429_vm5, %v1615_v42, 0.0  ;;  %v840_v2 = vsel %vm712_vm1, %v622_v43, %v776_v51  ;;  %v777_v50 = vmul.f32 0.01, %v627_v57  ;;  %v838_v18 = vsel %vm710_vm2, %v614_v19, %v774_v29 }
 0x169   :  { %v1731_v60 = vadd.f32 %v1730_v56, %v1729_v48  ;;  %v1968_v54 = vpack.c.bf16 %v840_v2, %v840_v2  ;;  %v1618_v55 = vmul.f32 %v840_v2, %v840_v2  ;;  %vm713_vm6 = vcmp.ge.f32.partialorder %v627_v57, 0.0 }
 0x16a   :  { %v1966_v22 = vpack.c.bf16 %v838_v18, %v838_v18  ;;  %v1535_v47 = vsel %vm1429_vm5, %v838_v18, 0.0  ;;  %v1616_v62 = vmul.f32 %v838_v18, %v838_v18  ;;  %v843_v61 = vsel %vm715_vm3, %v635_v28, %v779_v53 }
 0x16b   :  { %v1537_v1 = vsel %vm1429_vm5, %v839_v8, 0.0  ;;  %1161 = vst.msk [vmem:[%s2910_s3 + $0xdc] sm:$0xf] %vm1105_vm4, %v1968_v54  ;;  %v1536_v52 = vadd.f32 %v1535_v47, %v1534_v44  ;;  %v1971_v5 = vpack.c.bf16 %v843_v61, %v843_v61  ;;  %v1734_v35 = vsel %vm1429_vm5, %v1617_v39, 0.0 }
 0x16c   :  { %1159 = vst.msk [vmem:[%s2910_s3 + $0xd4] sm:$0xf] %vm1105_vm4, %v1966_v22  ;;  %v1732_v23 = vsel %vm1429_vm5, %v1616_v62, 0.0  ;;  %v841_v10 = vsel %vm713_vm6, %v627_v57, %v777_v50  ;;  %v638_v27 = vadd.f32 %v2704_v33, %v2542_v49  ;;  %v1539_v0 = vsel %vm1429_vm5, %v840_v2, 0.0 }
 0x16d   :  { %v1538_v41 = vadd.f32 %v1537_v1, %v1536_v52  ;;  %v1733_v38 = vadd.f32 %v1732_v23, %v1731_v60  ;;  %1164 = vst.msk [vmem:[%s2910_s3 + $0xe8] sm:$0xf] %vm1105_vm4, %v1971_v5  ;;  %v1969_v32 = vpack.c.bf16 %v841_v10, %v841_v10  ;;  %v1736_v3 = vsel %vm1429_vm5, %v1618_v55, 0.0 }
 0x16e   :  { %v1619_v4 = vmul.f32 %v841_v10, %v841_v10  ;;  %vm716_vm7 = vcmp.ge.f32.partialorder %v638_v27, 0.0  ;;  %v780_v59 = vmul.f32 0.01, %v638_v27  ;;  %v630_v6 = vadd.f32 %v2704_v33, %v2551_v58 }
 0x16f   :  { %v1735_v21 = vadd.f32 %v1734_v35, %v1733_v38  ;;  %1162 = vst.msk [vmem:[%s2910_s3 + $0xe0] sm:$0xf] %vm1105_vm4, %v1969_v32  ;;  %v1540_v49 = vadd.f32 %v1539_v0, %v1538_v41  ;;  %v651_v7 = vadd.f32 %v2704_v33, %v2570_v20  ;;  %v1541_v11 = vsel %vm1429_vm5, %v841_v10, 0.0 }
 0x170   :  { %v844_v12 = vsel %vm716_vm7, %v638_v27, %v780_v59  ;;  %v643_v24 = vadd.f32 %v2704_v33, %v2573_v31  ;;  %v654_v8 = vadd.f32 %v2704_v33, %v2576_v45  ;;  %v1738_v16 = vsel %vm1429_vm5, %v1619_v4, 0.0 }
 0x171   :  { %v1542_v63 = vadd.f32 %v1541_v11, %v1540_v49  ;;  %v1737_v26 = vadd.f32 %v1736_v3, %v1735_v21  ;;  %v1972_v9 = vpack.c.bf16 %v844_v12, %v844_v12  ;;  %vm714_vm8 = vcmp.ge.f32.partialorder %v630_v6, 0.0 }
 0x172   :  { %v778_v25 = vmul.f32 0.01, %v630_v6  ;;  %vm719_vm9 = vcmp.ge.f32.partialorder %v651_v7, 0.0  ;;  %v1621_v58 = vmul.f32 %v843_v61, %v843_v61  ;;  %v783_v20 = vmul.f32 0.01, %v651_v7 }
 0x173   :  { %v1739_v30 = vadd.f32 %v1738_v16, %v1737_v26  ;;  %1165 = vst.msk [vmem:[%s2910_s3 + $0xec] sm:$0xf] %vm1105_vm4, %v1972_v9  ;;  %v781_v31 = vmul.f32 0.01, %v643_v24  ;;  %vm717_vm10 = vcmp.ge.f32.partialorder %v643_v24, 0.0  ;;  %vm720_vm11 = vcmp.ge.f32.partialorder %v654_v8, 0.0 }
 0x174   :  { %v842_v13 = vsel %vm714_vm8, %v630_v6, %v778_v25  ;;  %v784_v45 = vmul.f32 0.01, %v654_v8  ;;  %v847_v19 = vsel %vm719_vm9, %v651_v7, %v783_v20  ;;  %v1545_v28 = vsel %vm1429_vm5, %v843_v61, 0.0 }
 0x175   :  { %v1970_v17 = vpack.c.bf16 %v842_v13, %v842_v13  ;;  %v1543_v15 = vsel %vm1429_vm5, %v842_v13, 0.0  ;;  %v1620_v43 = vmul.f32 %v842_v13, %v842_v13  ;;  %v1622_v36 = vmul.f32 %v844_v12, %v844_v12 }
 0x176   :  { %v1544_v46 = vadd.f32 %v1543_v15, %v1542_v63  ;;  %v1975_v14 = vpack.c.bf16 %v847_v19, %v847_v19  ;;  %v845_v37 = vsel %vm717_vm10, %v643_v24, %v781_v31  ;;  %v848_v40 = vsel %vm720_vm11, %v654_v8, %v784_v45 }
 0x177   :  { %1163 = vst.msk [vmem:[%s2910_s3 + $0xe4] sm:$0xf] %vm1105_vm4, %v1970_v17  ;;  %v1740_v57 = vsel %vm1429_vm5, %v1620_v43, 0.0  ;;  %v646_v42 = vadd.f32 %v2704_v33, %v2583_v34  ;;  %v1973_v51 = vpack.c.bf16 %v845_v37, %v845_v37  ;;  %v1742_v56 = vsel %vm1429_vm5, %v1621_v58, 0.0 }
 0x178   :  { %v1546_v44 = vadd.f32 %v1545_v28, %v1544_v46  ;;  %v1741_v48 = vadd.f32 %v1740_v57, %v1739_v30  ;;  %1168 = vst.msk [vmem:[%s2910_s3 + $0xf8] sm:$0xf] %vm1105_vm4, %v1975_v14  ;;  %v1547_v29 = vsel %vm1429_vm5, %v844_v12, 0.0  ;;  %v1623_v53 = vmul.f32 %v845_v37, %v845_v37 }
 0x179   :  { %v1976_v39 = vpack.c.bf16 %v848_v40, %v848_v40  ;;  %1166 = vst.msk [vmem:[%s2910_s3 + $0xf0] sm:$0xf] %vm1105_vm4, %v1973_v51  ;;  %vm718_vm12 = vcmp.ge.f32.partialorder %v646_v42, 0.0  ;;  %v1744_v33 = vsel %vm1429_vm5, %v1622_v36, 0.0  ;;  %v1549_v2 = vsel %vm1429_vm5, %v845_v37, 0.0 }
 0x17a   :  { %v1743_v60 = vadd.f32 %v1742_v56, %v1741_v48  ;;  %v1548_v34 = vadd.f32 %v1547_v29, %v1546_v44  ;;  %v782_v50 = vmul.f32 0.01, %v646_v42  ;;  %v1625_v18 = vmul.f32 %v847_v19, %v847_v19 }
 0x17b   :  { %1169 = vst.msk [vmem:[%s2910_s3 + $0xfc] sm:$0xf] %vm1105_vm4, %v1976_v39  ;;  %v1746_v22 = vsel %vm1429_vm5, %v1623_v53, 0.0  ;;  %v1553_v35 = vsel %vm1429_vm5, %v847_v19, 0.0  ;;  %v1626_v23 = vmul.f32 %v848_v40, %v848_v40  ;;  %v1555_v38 = vsel %vm1429_vm5, %v848_v40, 0.0 }
 0x17c   :  { %v1550_v54 = vadd.f32 %v1549_v2, %v1548_v34  ;;  %v1745_v55 = vadd.f32 %v1744_v33, %v1743_v60  ;;  %v846_v47 = vsel %vm718_vm12, %v646_v42, %v782_v50  ;;  %v1750_v41 = vsel %vm1429_vm5, %v1625_v18, 0.0 }
 0x17d   :  { %v1974_v61 = vpack.c.bf16 %v846_v47, %v846_v47  ;;  %v1551_v1 = vsel %vm1429_vm5, %v846_v47, 0.0  ;;  %v1624_v52 = vmul.f32 %v846_v47, %v846_v47  ;;  %v1752_v4 = vsel %vm1429_vm5, %v1626_v23, 0.0 }
 0x17e   :  { %v1747_v62 = vadd.f32 %v1746_v22, %v1745_v55  ;;  %v1552_v5 = vadd.f32 %v1551_v1, %v1550_v54  ;;  %vm1762_vm13 = vcmask 58368  }
 0x17f   :  { %1167 = vst.msk [vmem:[%s2910_s3 + $0xf4] sm:$0xf] %vm1105_vm4, %v1974_v61  ;;  %v1748_v10 = vsel %vm1429_vm5, %v1624_v52, 0.0  ;;  %s2145_s3 = smov [#allocation2]   ;;  %vm1760_vm4 = vcmask 1040384  }
 0x180   :  { %v1554_v27 = vadd.f32 %v1553_v35, %v1552_v5  ;;  %v1749_v0 = vadd.f32 %v1748_v10, %v1747_v62  ;;  %s1772_s19 = sshll.u32 %s2145_s3, 4  ;;  %s1773_s19 = int_to_ptr.vmem [resolvable:$true] %s1772_s19 }
 0x181   :  { %s2120_s20 = scalar_lea.vmem %s1773_s19, 32  ;;  %p2125_p1 = scmp.lt.s32.totalorder %s1773_s19, %s1773_s19 }
 0x182   :  { %v1556_v32 = vadd.f32 %v1555_v38, %v1554_v27  ;;  %v1751_v3 = vadd.f32 %v1750_v41, %v1749_v0  ;;  %p2121_p0 = scmp.ne.s32.totalorder %s1773_s19, %s2120_s20  ;;  %p2126_p2 = scmp.lt.s32.totalorder %s2120_s20, %s2120_s20 }
 0x184   :  { %v1557_v59 = vrot.slane %v1556_v32, 4  ;;  %v1753_v21 = vadd.f32 %v1752_v4, %v1751_v3  ;;  %p2127_p3 = por %p2126_p2, %p2125_p1 }
 0x186   :  { %v1558_v49 = vadd.f32 %v1557_v59, %v1556_v32  ;;  %v1754_v6 = vrot.slane %v1753_v21, 4  ;;  %p2128_p4 = pnand %p2127_p3, %p2121_p0 }
 0x188   :  { %v1559_v7 = vrot.slane %v1558_v49, 2  ;;  %v1755_v11 = vadd.f32 %v1754_v6, %v1753_v21 }
 0x18a   :  { %v1560_v12 = vadd.f32 %v1559_v7, %v1558_v49  ;;  %v1756_v24 = vrot.slane %v1755_v11, 2 }
 0x18c   :  { %v1561_v8 = vrot.slane %v1560_v12, 1  ;;  %v1757_v63 = vadd.f32 %v1756_v24, %v1755_v11 }
 0x18e   :  { %v1758_v26 = vrot.slane %v1757_v63, 1  ;;  %v1562_v9 = vadd.f32 %v1561_v8, %v1560_v12 }
 0x190   :  { %v1759_v16 = vadd.f32 %v1758_v26, %v1757_v63 }
 0x192   :  { %v1761_v25 = vsel %vm1760_vm4, %v1562_v9, %v1759_v16 }
 0x193   :  { %1763 = vst.msk [vmem:[#allocation2] sm:$0x3] %vm1762_vm13, %v1761_v25 }
 0x194   :  { %2131 = shalt.err (!%p2128_p4)
}
 0x195   :  { %s2132_s1 = scalar_lea.hbm %s2911_s4, 32 }
 0x196   :  { %p2133_p5 = scmp.ne.s32.totalorder %s2911_s4, %s2132_s1  ;;  %p2136_p6 = scmp.lt.u32.totalorder %s2132_s1, %s2911_s4 }
 0x198   :  { %p2138_p7 = pnand %p2136_p6, %p2133_p5 }
 0x19a   :  { %2141 = shalt.err (!%p2138_p7)
}
 0x19b   :  { %1775 = dma.vmem_to_hbm [thread:$0]  %s1773_s19, 32, %s2911_s4, [#allocation3]  }
 0x19c   :  { %2142 = dma.done.wait [#allocation3], 32  }
 0x19d   :  { %2143 = vsyncadd [#allocation3], 4294967264 }
 0x19e   :  { %1781 = vsyncpa [#allocation3], 1 }

</bundles_post_ra>
